<compile_context>
chip_gen: v7x
topology: tpu7x:2x2x1
jax: 0.10.0
libtpu: 0.0.40
codegen_flags: <defaults>
</compile_context>

<pallas_src>
import functools

import jax
import jax.numpy as jnp
import numpy as np
from jax.experimental import pallas as pl
from jax.experimental.pallas import tpu as pltpu

NUM_CH = 100       # TCN channels (num_inputs and every level)
NUM_LEVELS = 5     # num_chans = [100] * 5
KSIZE = 2          # TemporalConvNet default kernel_size
FEAT = 4           # sequence length L (feat_dim); linear2 = Linear(4, 256)
OUT_DIM = 256
C_PAD = 128        # channel padding 100 -> 128 (lanes)
L_PAD = 8          # time padding 4 -> 8 (sublanes)

assert FEAT <= L_PAD  # roll-wrap masking invariant: every masked dilation d < L_PAD


# ----------------------------------------------------------------------------- kernel
def _tcn_kernel(x_ref, w01_ref, w1_ref, b_ref, w2_ref, b2_ref, out_ref, *, block_batch):
    h = x_ref[...]                                      # (Bb*L_PAD, C_PAD) f32

    # Hoisted causal-shift masks (only d in {1, 2} ever reach the masked path since
    # d >= FEAT has no valid x[t-d] tap).
    t_idx = jax.lax.broadcasted_iota(jnp.int32, h.shape, 0) % L_PAD
    shift_masks = {d: t_idx >= d
                   for d in (2 ** lv for lv in range(NUM_LEVELS)) if d < FEAT}

    fused = 0
    single = 0
    conv = 0
    for level in range(NUM_LEVELS):
        d = 2 ** level                                  # dilation
        res = h
        for _c in range(2):                             # two causal convs per block
            if d < FEAT:
                # tap0 multiplies x[t-d]: roll rows down by d, zero rows t < d.
                # (roll wraps across batch boundaries, but d < L_PAD so every wrapped
                #  row lands at t < d and is killed by the mask -> no leakage.)
                h_shift = jnp.where(shift_masks[d],
                                    pltpu.roll(h, shift=d, axis=0), 0.0)
                # Fuse both taps into one K=256 matmul (fills 256-deep v6e/v7x MXU).
                h_cat = jnp.concatenate([h, h_shift], axis=1)      # (rows, 2*C_PAD)
                out = jnp.dot(h_cat, w01_ref[fused],
                              preferred_element_type=jnp.float32)
                fused += 1
            else:
                # x[t-d] is always out of range for t < FEAT: single K=128 tap.
                out = jnp.dot(h, w1_ref[single],
                              preferred_element_type=jnp.float32)
                single += 1
            h = jnp.maximum(out + b_ref[conv], 0.0)     # bias + ReLU (dropout = id)
            conv += 1
        h = jnp.maximum(h + res, 0.0)                   # residual + ReLU

    # linear2: contract the time axis (L=4, padded to 8 with zero weight rows).
    # Bounded unrolled per-batch 2D dot (Bb <= 8); each store is lane-dense (256).
    w2 = w2_ref[...]                                    # (L_PAD, OUT_DIM)
    b2 = b2_ref[...]                                    # (1, OUT_DIM)
    for b in range(block_batch):
        hb = h[b * L_PAD:(b + 1) * L_PAD, :]            # (L_PAD, C_PAD)
        ob = jax.lax.dot_general(hb, w2,                # hb^T @ w2 -> (C_PAD, OUT_DIM)
                                 dimension_numbers=(((0,), (0,)), ((), ())),
                                 preferred_element_type=jnp.float32)
        out_ref[b] = ob[:NUM_CH, :] + b2                # (100, 256), lane-dense store


# ------------------------------------------------------------------------ params / glue
def init_raw_params(key):
    keys = jax.random.split(key, 4 * NUM_LEVELS + 2)
    conv = []
    ki = 0
    for _level in range(NUM_LEVELS):
        for _c in range(2):
            w = 0.01 * jax.random.normal(keys[ki], (NUM_CH, NUM_CH, KSIZE), jnp.float32)
            ki += 1
            b = 0.01 * jax.random.normal(keys[ki], (NUM_CH,), jnp.float32)
            ki += 1
            conv.append((w, b))
    w2 = 0.05 * jax.random.normal(keys[ki], (OUT_DIM, FEAT), jnp.float32); ki += 1
    b2 = 0.05 * jax.random.normal(keys[ki], (OUT_DIM,), jnp.float32)
    return conv, w2, b2


def pack_params(conv, w2, b2):
    """Pack PyTorch-layout weights into kernel layout.

    Conv1d weight is (out_ch, in_ch, k).  Causal conv with chomp:
        out[t] = W[:,:,0] @ x[t-d] + W[:,:,1] @ x[t] + bias
    The kernel uses row-vector activations, so each tap is stored transposed (in, out).
    Levels with d < FEAT get a stacked (2*C_PAD, C_PAD) weight: rows 0..127 multiply h
    (tap1), rows 128..255 multiply the shifted h (tap0) -- matching the lane-concat
    order in the kernel.  Levels with d >= FEAT keep only tap1.
    """
    pc = C_PAD - NUM_CH
    w01_list, w1_list, b_list = [], [], []
    for level in range(NUM_LEVELS):
        d = 2 ** level
        for c in range(2):
            w, b = conv[level * 2 + c]
            w1t = jnp.pad(w[:, :, 1].T, ((0, pc), (0, pc)))        # multiplies h
            if d < FEAT:
                w0t = jnp.pad(w[:, :, 0].T, ((0, pc), (0, pc)))    # multiplies h_shift
                w01_list.append(jnp.concatenate([w1t, w0t], axis=0))
            else:
                w1_list.append(w1t)
            b_list.append(jnp.pad(b, (0, pc))[None, :])
    w01s = jnp.stack(w01_list)                                     # (4, 256, 128)
    w1s = jnp.stack(w1_list)                                       # (6, 128, 128)
    bs = jnp.stack(b_list)                                         # (10, 1, 128)
    w2t = jnp.pad(w2.T, ((0, L_PAD - FEAT), (0, 0)))               # (8, 256), pad rows 0
    return w01s, w1s, bs, w2t, b2[None, :]


@functools.partial(jax.jit, static_argnames=("block_batch",))
def dark_gen_recons_tcn_forward(x, packed, block_batch=8):
    """x: (B, 100, 4) NCL float32 -> (B, 100, 256)."""
    B, C, L = x.shape
    assert C == NUM_CH and L == FEAT
    w01s, w1s, bs, w2t, b2 = packed

    Bb = min(block_batch, B)
    nblk = (B + Bb - 1) // Bb
    B_pad = nblk * Bb

    xt = jnp.transpose(x, (0, 2, 1)).astype(jnp.float32)           # (B, L, C)
    xt = jnp.pad(xt, ((0, B_pad - B), (0, L_PAD - FEAT), (0, C_PAD - NUM_CH)))
    xk = xt.reshape(B_pad * L_PAD, C_PAD)                          # (B_pad*L_PAD, C_PAD)

    kernel = functools.partial(_tcn_kernel, block_batch=Bb)
    out = pl.pallas_call(
        kernel,
        out_shape=jax.ShapeDtypeStruct((B_pad, NUM_CH, OUT_DIM), jnp.float32),
        grid=(nblk,),
        in_specs=[
            pl.BlockSpec((Bb * L_PAD, C_PAD), lambda i: (i, 0)),   # activation slab
            pl.BlockSpec(w01s.shape, lambda i: (0, 0, 0)),         # fused two-tap weights
            pl.BlockSpec(w1s.shape, lambda i: (0, 0, 0)),          # single-tap weights
            pl.BlockSpec(bs.shape, lambda i: (0, 0, 0)),           # conv biases
            pl.BlockSpec(w2t.shape, lambda i: (0, 0)),             # linear2 weight
            pl.BlockSpec(b2.shape, lambda i: (0, 0)),              # linear2 bias
        ],
        out_specs=pl.BlockSpec((Bb, NUM_CH, OUT_DIM), lambda i: (i, 0, 0)),
        compiler_params=pltpu.CompilerParams(
            dimension_semantics=("parallel",)),
    )(xk, w01s, w1s, bs, w2t, b2)
    return out if B_pad == B else out[:B]


# ------------------------------------------------------------------ pure-JAX reference
def reference_forward(x, conv, w2, b2):
    h = x                                                          # (B, 100, 4)
    for level in range(NUM_LEVELS):
        d = 2 ** level
        res = h
        for c in range(2):
            w, b = conv[level * 2 + c]
            h_prev = jnp.pad(h, ((0, 0), (0, 0), (d, 0)))[:, :, :FEAT]
            out = (jnp.einsum('oi,bit->bot', w[:, :, 0], h_prev)
                   + jnp.einsum('oi,bit->bot', w[:, :, 1], h)
                   + b[None, :, None])
            h = jnp.maximum(out, 0.0)
        h = jnp.maximum(h + res, 0.0)
    return jnp.einsum('bct,ot->bco', h, w2) + b2[None, None, :]


if __name__ == "__main__":
    key = jax.random.PRNGKey(0)
    pkey, xkey = jax.random.split(key)
    conv, w2, b2 = init_raw_params(pkey)
    packed = pack_params(conv, w2, b2)

    B = 2
    x = jax.random.normal(xkey, (B, NUM_CH, FEAT), jnp.float32)

    out = dark_gen_recons_tcn_forward(x, packed)
    out = jax.block_until_ready(out)

    ref = reference_forward(x, conv, w2, b2)
    assert out.shape == (B, NUM_CH, OUT_DIM)
    np.testing.assert_allclose(np.asarray(out), np.asarray(ref), rtol=1e-4, atol=1e-5)
    print("KERNEL_OK")
</pallas_src>

<mosaic_0001>
module attributes {stable_mosaic.version = 11 : i64} {
  func.func @_tcn_kernel(%arg0: i32, %arg1: memref<16x128xf32, #tpu.memory_space<vmem>>, %arg2: memref<4x256x128xf32, #tpu.memory_space<vmem>>, %arg3: memref<6x128x128xf32, #tpu.memory_space<vmem>>, %arg4: memref<10x1x128xf32, #tpu.memory_space<vmem>>, %arg5: memref<8x256xf32, #tpu.memory_space<vmem>>, %arg6: memref<1x256xf32, #tpu.memory_space<vmem>>, %arg7: memref<2x100x256xf32, #tpu.memory_space<vmem>>) attributes {dimension_semantics = [#tpu.dimension_semantics<parallel>], iteration_bounds = array<i64: 1>, scalar_prefetch = 0 : i64, scratch_operands = 0 : i64, tpu.core_type = #tpu.core_type<tc>, window_params = [{transform_indices = @transform_0, window_bounds = array<i64: 16, 128>}, {pipeline_mode = #tpu.pipeline_mode<synchronous>, transform_indices = @transform_1, window_bounds = array<i64: 4, 256, 128>}, {pipeline_mode = #tpu.pipeline_mode<synchronous>, transform_indices = @transform_2, window_bounds = array<i64: 6, 128, 128>}, {pipeline_mode = #tpu.pipeline_mode<synchronous>, transform_indices = @transform_3, window_bounds = array<i64: 10, 1, 128>}, {pipeline_mode = #tpu.pipeline_mode<synchronous>, transform_indices = @transform_4, window_bounds = array<i64: 8, 256>}, {pipeline_mode = #tpu.pipeline_mode<synchronous>, transform_indices = @transform_5, window_bounds = array<i64: 1, 256>}, {transform_indices = @transform_6, window_bounds = array<i64: 2, 100, 256>}]} {
    %c0 = arith.constant 0 : index
    %c0_0 = arith.constant 0 : index
    %0 = vector.load %arg1[%c0, %c0_0] : memref<16x128xf32, #tpu.memory_space<vmem>>, vector<16x128xf32>
    %1 = tpu.iota {dimensions = array<i32: 0>} : vector<16x128xi32>
    %c8_i32 = arith.constant 8 : i32
    %c0_i32 = arith.constant 0 : i32
    %2 = arith.cmpi eq, %c8_i32, %c0_i32 : i32
    %c1_i32 = arith.constant 1 : i32
    %3 = arith.select %2, %c1_i32, %c8_i32 : i32
    %4 = vector.broadcast %3 : i32 to vector<16x128xi32>
    %5 = arith.remsi %1, %4 : vector<16x128xi32>
    %c0_i32_1 = arith.constant 0 : i32
    %6 = vector.broadcast %c0_i32_1 : i32 to vector<16x128xi32>
    %7 = arith.cmpi ne, %5, %6 : vector<16x128xi32>
    %c0_i32_2 = arith.constant 0 : i32
    %8 = vector.broadcast %c0_i32_2 : i32 to vector<16x128xi32>
    %9 = arith.cmpi slt, %5, %8 : vector<16x128xi32>
    %c0_i32_3 = arith.constant 0 : i32
    %10 = arith.cmpi slt, %3, %c0_i32_3 : i32
    %11 = vector.broadcast %10 : i1 to vector<16x128xi1>
    %12 = vector.broadcast %11 : vector<16x128xi1> to vector<16x128xi1>
    %13 = arith.xori %9, %12 : vector<16x128xi1>
    %14 = arith.andi %13, %7 : vector<16x128xi1>
    %15 = vector.broadcast %3 : i32 to vector<16x128xi32>
    %16 = arith.addi %5, %15 : vector<16x128xi32>
    %17 = arith.select %14, %16, %5 : vector<16x128xi1>, vector<16x128xi32>
    %c1_i32_4 = arith.constant 1 : i32
    %18 = vector.broadcast %c1_i32_4 : i32 to vector<16x128xi32>
    %19 = arith.cmpi sge, %17, %18 : vector<16x128xi32>
    %c2_i32 = arith.constant 2 : i32
    %20 = vector.broadcast %c2_i32 : i32 to vector<16x128xi32>
    %21 = arith.cmpi sge, %17, %20 : vector<16x128xi32>
    %c1_i32_5 = arith.constant 1 : i32
    %22 = tpu.dynamic_rotate %0 by %c1_i32_5 dim 0 : vector<16x128xf32>, i32 -> vector<16x128xf32>
    %cst = arith.constant 0.000000e+00 : f32
    %23 = vector.broadcast %cst : f32 to vector<16x128xf32>
    %24 = arith.select %19, %22, %23 : vector<16x128xi1>, vector<16x128xf32>
    %25 = tpu.concatenate %0, %24 in 1 : vector<16x128xf32>, vector<16x128xf32> -> vector<16x256xf32>
    %c0_6 = arith.constant 0 : index
    %c0_7 = arith.constant 0 : index
    %c0_8 = arith.constant 0 : index
    %26 = vector.load %arg2[%c0_6, %c0_7, %c0_8] : memref<4x256x128xf32, #tpu.memory_space<vmem>>, vector<1x256x128xf32>
    %27 = vector.shape_cast %26 : vector<1x256x128xf32> to vector<256x128xf32>
    %cst_9 = arith.constant dense<0.000000e+00> : vector<16x128xf32>
    %28 = tpu.matmul %25, %27, %cst_9 {dimension_numbers = #tpu.dot_dimension_numbers<[1], [0], [0], [1], [0, 0, 1, 1], [], []>} : vector<16x256xf32>, vector<256x128xf32>, vector<16x128xf32> -> vector<16x128xf32>
    %c0_10 = arith.constant 0 : index
    %c0_11 = arith.constant 0 : index
    %c0_12 = arith.constant 0 : index
    %29 = vector.load %arg4[%c0_10, %c0_11, %c0_12] : memref<10x1x128xf32, #tpu.memory_space<vmem>>, vector<1x1x128xf32>
    %30 = vector.shape_cast %29 : vector<1x1x128xf32> to vector<1x128xf32>
    %31 = vector.broadcast %30 : vector<1x128xf32> to vector<16x128xf32>
    %32 = arith.addf %28, %31 : vector<16x128xf32>
    %cst_13 = arith.constant 0.000000e+00 : f32
    %33 = vector.broadcast %cst_13 : f32 to vector<16x128xf32>
    %34 = arith.maximumf %32, %33 : vector<16x128xf32>
    %c1_i32_14 = arith.constant 1 : i32
    %35 = tpu.dynamic_rotate %34 by %c1_i32_14 dim 0 : vector<16x128xf32>, i32 -> vector<16x128xf32>
    %cst_15 = arith.constant 0.000000e+00 : f32
    %36 = vector.broadcast %cst_15 : f32 to vector<16x128xf32>
    %37 = arith.select %19, %35, %36 : vector<16x128xi1>, vector<16x128xf32>
    %38 = tpu.concatenate %34, %37 in 1 : vector<16x128xf32>, vector<16x128xf32> -> vector<16x256xf32>
    %c1 = arith.constant 1 : index
    %c0_16 = arith.constant 0 : index
    %c0_17 = arith.constant 0 : index
    %39 = vector.load %arg2[%c1, %c0_16, %c0_17] : memref<4x256x128xf32, #tpu.memory_space<vmem>>, vector<1x256x128xf32>
    %40 = vector.shape_cast %39 : vector<1x256x128xf32> to vector<256x128xf32>
    %cst_18 = arith.constant dense<0.000000e+00> : vector<16x128xf32>
    %41 = tpu.matmul %38, %40, %cst_18 {dimension_numbers = #tpu.dot_dimension_numbers<[1], [0], [0], [1], [0, 0, 1, 1], [], []>} : vector<16x256xf32>, vector<256x128xf32>, vector<16x128xf32> -> vector<16x128xf32>
    %c1_19 = arith.constant 1 : index
    %c0_20 = arith.constant 0 : index
    %c0_21 = arith.constant 0 : index
    %42 = vector.load %arg4[%c1_19, %c0_20, %c0_21] : memref<10x1x128xf32, #tpu.memory_space<vmem>>, vector<1x1x128xf32>
    %43 = vector.shape_cast %42 : vector<1x1x128xf32> to vector<1x128xf32>
    %44 = vector.broadcast %43 : vector<1x128xf32> to vector<16x128xf32>
    %45 = arith.addf %41, %44 : vector<16x128xf32>
    %cst_22 = arith.constant 0.000000e+00 : f32
    %46 = vector.broadcast %cst_22 : f32 to vector<16x128xf32>
    %47 = arith.maximumf %45, %46 : vector<16x128xf32>
    %48 = arith.addf %47, %0 : vector<16x128xf32>
    %cst_23 = arith.constant 0.000000e+00 : f32
    %49 = vector.broadcast %cst_23 : f32 to vector<16x128xf32>
    %50 = arith.maximumf %48, %49 : vector<16x128xf32>
    %c2_i32_24 = arith.constant 2 : i32
    %51 = tpu.dynamic_rotate %50 by %c2_i32_24 dim 0 : vector<16x128xf32>, i32 -> vector<16x128xf32>
    %cst_25 = arith.constant 0.000000e+00 : f32
    %52 = vector.broadcast %cst_25 : f32 to vector<16x128xf32>
    %53 = arith.select %21, %51, %52 : vector<16x128xi1>, vector<16x128xf32>
    %54 = tpu.concatenate %50, %53 in 1 : vector<16x128xf32>, vector<16x128xf32> -> vector<16x256xf32>
    %c2 = arith.constant 2 : index
    %c0_26 = arith.constant 0 : index
    %c0_27 = arith.constant 0 : index
    %55 = vector.load %arg2[%c2, %c0_26, %c0_27] : memref<4x256x128xf32, #tpu.memory_space<vmem>>, vector<1x256x128xf32>
    %56 = vector.shape_cast %55 : vector<1x256x128xf32> to vector<256x128xf32>
    %cst_28 = arith.constant dense<0.000000e+00> : vector<16x128xf32>
    %57 = tpu.matmul %54, %56, %cst_28 {dimension_numbers = #tpu.dot_dimension_numbers<[1], [0], [0], [1], [0, 0, 1, 1], [], []>} : vector<16x256xf32>, vector<256x128xf32>, vector<16x128xf32> -> vector<16x128xf32>
    %c2_29 = arith.constant 2 : index
    %c0_30 = arith.constant 0 : index
    %c0_31 = arith.constant 0 : index
    %58 = vector.load %arg4[%c2_29, %c0_30, %c0_31] : memref<10x1x128xf32, #tpu.memory_space<vmem>>, vector<1x1x128xf32>
    %59 = vector.shape_cast %58 : vector<1x1x128xf32> to vector<1x128xf32>
    %60 = vector.broadcast %59 : vector<1x128xf32> to vector<16x128xf32>
    %61 = arith.addf %57, %60 : vector<16x128xf32>
    %cst_32 = arith.constant 0.000000e+00 : f32
    %62 = vector.broadcast %cst_32 : f32 to vector<16x128xf32>
    %63 = arith.maximumf %61, %62 : vector<16x128xf32>
    %c2_i32_33 = arith.constant 2 : i32
    %64 = tpu.dynamic_rotate %63 by %c2_i32_33 dim 0 : vector<16x128xf32>, i32 -> vector<16x128xf32>
    %cst_34 = arith.constant 0.000000e+00 : f32
    %65 = vector.broadcast %cst_34 : f32 to vector<16x128xf32>
    %66 = arith.select %21, %64, %65 : vector<16x128xi1>, vector<16x128xf32>
    %67 = tpu.concatenate %63, %66 in 1 : vector<16x128xf32>, vector<16x128xf32> -> vector<16x256xf32>
    %c3 = arith.constant 3 : index
    %c0_35 = arith.constant 0 : index
    %c0_36 = arith.constant 0 : index
    %68 = vector.load %arg2[%c3, %c0_35, %c0_36] : memref<4x256x128xf32, #tpu.memory_space<vmem>>, vector<1x256x128xf32>
    %69 = vector.shape_cast %68 : vector<1x256x128xf32> to vector<256x128xf32>
    %cst_37 = arith.constant dense<0.000000e+00> : vector<16x128xf32>
    %70 = tpu.matmul %67, %69, %cst_37 {dimension_numbers = #tpu.dot_dimension_numbers<[1], [0], [0], [1], [0, 0, 1, 1], [], []>} : vector<16x256xf32>, vector<256x128xf32>, vector<16x128xf32> -> vector<16x128xf32>
    %c3_38 = arith.constant 3 : index
    %c0_39 = arith.constant 0 : index
    %c0_40 = arith.constant 0 : index
    %71 = vector.load %arg4[%c3_38, %c0_39, %c0_40] : memref<10x1x128xf32, #tpu.memory_space<vmem>>, vector<1x1x128xf32>
    %72 = vector.shape_cast %71 : vector<1x1x128xf32> to vector<1x128xf32>
    %73 = vector.broadcast %72 : vector<1x128xf32> to vector<16x128xf32>
    %74 = arith.addf %70, %73 : vector<16x128xf32>
    %cst_41 = arith.constant 0.000000e+00 : f32
    %75 = vector.broadcast %cst_41 : f32 to vector<16x128xf32>
    %76 = arith.maximumf %74, %75 : vector<16x128xf32>
    %77 = arith.addf %76, %50 : vector<16x128xf32>
    %cst_42 = arith.constant 0.000000e+00 : f32
    %78 = vector.broadcast %cst_42 : f32 to vector<16x128xf32>
    %79 = arith.maximumf %77, %78 : vector<16x128xf32>
    %c0_43 = arith.constant 0 : index
    %c0_44 = arith.constant 0 : index
    %c0_45 = arith.constant 0 : index
    %80 = vector.load %arg3[%c0_43, %c0_44, %c0_45] : memref<6x128x128xf32, #tpu.memory_space<vmem>>, vector<1x128x128xf32>
    %81 = vector.shape_cast %80 : vector<1x128x128xf32> to vector<128x128xf32>
    %cst_46 = arith.constant dense<0.000000e+00> : vector<16x128xf32>
    %82 = tpu.matmul %79, %81, %cst_46 {dimension_numbers = #tpu.dot_dimension_numbers<[1], [0], [0], [1], [0, 0, 1, 1], [], []>} : vector<16x128xf32>, vector<128x128xf32>, vector<16x128xf32> -> vector<16x128xf32>
    %c4 = arith.constant 4 : index
    %c0_47 = arith.constant 0 : index
    %c0_48 = arith.constant 0 : index
    %83 = vector.load %arg4[%c4, %c0_47, %c0_48] : memref<10x1x128xf32, #tpu.memory_space<vmem>>, vector<1x1x128xf32>
    %84 = vector.shape_cast %83 : vector<1x1x128xf32> to vector<1x128xf32>
    %85 = vector.broadcast %84 : vector<1x128xf32> to vector<16x128xf32>
    %86 = arith.addf %82, %85 : vector<16x128xf32>
    %cst_49 = arith.constant 0.000000e+00 : f32
    %87 = vector.broadcast %cst_49 : f32 to vector<16x128xf32>
    %88 = arith.maximumf %86, %87 : vector<16x128xf32>
    %c1_50 = arith.constant 1 : index
    %c0_51 = arith.constant 0 : index
    %c0_52 = arith.constant 0 : index
    %89 = vector.load %arg3[%c1_50, %c0_51, %c0_52] : memref<6x128x128xf32, #tpu.memory_space<vmem>>, vector<1x128x128xf32>
    %90 = vector.shape_cast %89 : vector<1x128x128xf32> to vector<128x128xf32>
    %cst_53 = arith.constant dense<0.000000e+00> : vector<16x128xf32>
    %91 = tpu.matmul %88, %90, %cst_53 {dimension_numbers = #tpu.dot_dimension_numbers<[1], [0], [0], [1], [0, 0, 1, 1], [], []>} : vector<16x128xf32>, vector<128x128xf32>, vector<16x128xf32> -> vector<16x128xf32>
    %c5 = arith.constant 5 : index
    %c0_54 = arith.constant 0 : index
    %c0_55 = arith.constant 0 : index
    %92 = vector.load %arg4[%c5, %c0_54, %c0_55] : memref<10x1x128xf32, #tpu.memory_space<vmem>>, vector<1x1x128xf32>
    %93 = vector.shape_cast %92 : vector<1x1x128xf32> to vector<1x128xf32>
    %94 = vector.broadcast %93 : vector<1x128xf32> to vector<16x128xf32>
    %95 = arith.addf %91, %94 : vector<16x128xf32>
    %cst_56 = arith.constant 0.000000e+00 : f32
    %96 = vector.broadcast %cst_56 : f32 to vector<16x128xf32>
    %97 = arith.maximumf %95, %96 : vector<16x128xf32>
    %98 = arith.addf %97, %79 : vector<16x128xf32>
    %cst_57 = arith.constant 0.000000e+00 : f32
    %99 = vector.broadcast %cst_57 : f32 to vector<16x128xf32>
    %100 = arith.maximumf %98, %99 : vector<16x128xf32>
    %c2_58 = arith.constant 2 : index
    %c0_59 = arith.constant 0 : index
    %c0_60 = arith.constant 0 : index
    %101 = vector.load %arg3[%c2_58, %c0_59, %c0_60] : memref<6x128x128xf32, #tpu.memory_space<vmem>>, vector<1x128x128xf32>
    %102 = vector.shape_cast %101 : vector<1x128x128xf32> to vector<128x128xf32>
    %cst_61 = arith.constant dense<0.000000e+00> : vector<16x128xf32>
    %103 = tpu.matmul %100, %102, %cst_61 {dimension_numbers = #tpu.dot_dimension_numbers<[1], [0], [0], [1], [0, 0, 1, 1], [], []>} : vector<16x128xf32>, vector<128x128xf32>, vector<16x128xf32> -> vector<16x128xf32>
    %c6 = arith.constant 6 : index
    %c0_62 = arith.constant 0 : index
    %c0_63 = arith.constant 0 : index
    %104 = vector.load %arg4[%c6, %c0_62, %c0_63] : memref<10x1x128xf32, #tpu.memory_space<vmem>>, vector<1x1x128xf32>
    %105 = vector.shape_cast %104 : vector<1x1x128xf32> to vector<1x128xf32>
    %106 = vector.broadcast %105 : vector<1x128xf32> to vector<16x128xf32>
    %107 = arith.addf %103, %106 : vector<16x128xf32>
    %cst_64 = arith.constant 0.000000e+00 : f32
    %108 = vector.broadcast %cst_64 : f32 to vector<16x128xf32>
    %109 = arith.maximumf %107, %108 : vector<16x128xf32>
    %c3_65 = arith.constant 3 : index
    %c0_66 = arith.constant 0 : index
    %c0_67 = arith.constant 0 : index
    %110 = vector.load %arg3[%c3_65, %c0_66, %c0_67] : memref<6x128x128xf32, #tpu.memory_space<vmem>>, vector<1x128x128xf32>
    %111 = vector.shape_cast %110 : vector<1x128x128xf32> to vector<128x128xf32>
    %cst_68 = arith.constant dense<0.000000e+00> : vector<16x128xf32>
    %112 = tpu.matmul %109, %111, %cst_68 {dimension_numbers = #tpu.dot_dimension_numbers<[1], [0], [0], [1], [0, 0, 1, 1], [], []>} : vector<16x128xf32>, vector<128x128xf32>, vector<16x128xf32> -> vector<16x128xf32>
    %c7 = arith.constant 7 : index
    %c0_69 = arith.constant 0 : index
    %c0_70 = arith.constant 0 : index
    %113 = vector.load %arg4[%c7, %c0_69, %c0_70] : memref<10x1x128xf32, #tpu.memory_space<vmem>>, vector<1x1x128xf32>
    %114 = vector.shape_cast %113 : vector<1x1x128xf32> to vector<1x128xf32>
    %115 = vector.broadcast %114 : vector<1x128xf32> to vector<16x128xf32>
    %116 = arith.addf %112, %115 : vector<16x128xf32>
    %cst_71 = arith.constant 0.000000e+00 : f32
    %117 = vector.broadcast %cst_71 : f32 to vector<16x128xf32>
    %118 = arith.maximumf %116, %117 : vector<16x128xf32>
    %119 = arith.addf %118, %100 : vector<16x128xf32>
    %cst_72 = arith.constant 0.000000e+00 : f32
    %120 = vector.broadcast %cst_72 : f32 to vector<16x128xf32>
    %121 = arith.maximumf %119, %120 : vector<16x128xf32>
    %c4_73 = arith.constant 4 : index
    %c0_74 = arith.constant 0 : index
    %c0_75 = arith.constant 0 : index
    %122 = vector.load %arg3[%c4_73, %c0_74, %c0_75] : memref<6x128x128xf32, #tpu.memory_space<vmem>>, vector<1x128x128xf32>
    %123 = vector.shape_cast %122 : vector<1x128x128xf32> to vector<128x128xf32>
    %cst_76 = arith.constant dense<0.000000e+00> : vector<16x128xf32>
    %124 = tpu.matmul %121, %123, %cst_76 {dimension_numbers = #tpu.dot_dimension_numbers<[1], [0], [0], [1], [0, 0, 1, 1], [], []>} : vector<16x128xf32>, vector<128x128xf32>, vector<16x128xf32> -> vector<16x128xf32>
    %c8 = arith.constant 8 : index
    %c0_77 = arith.constant 0 : index
    %c0_78 = arith.constant 0 : index
    %125 = vector.load %arg4[%c8, %c0_77, %c0_78] : memref<10x1x128xf32, #tpu.memory_space<vmem>>, vector<1x1x128xf32>
    %126 = vector.shape_cast %125 : vector<1x1x128xf32> to vector<1x128xf32>
    %127 = vector.broadcast %126 : vector<1x128xf32> to vector<16x128xf32>
    %128 = arith.addf %124, %127 : vector<16x128xf32>
    %cst_79 = arith.constant 0.000000e+00 : f32
    %129 = vector.broadcast %cst_79 : f32 to vector<16x128xf32>
    %130 = arith.maximumf %128, %129 : vector<16x128xf32>
    %c5_80 = arith.constant 5 : index
    %c0_81 = arith.constant 0 : index
    %c0_82 = arith.constant 0 : index
    %131 = vector.load %arg3[%c5_80, %c0_81, %c0_82] : memref<6x128x128xf32, #tpu.memory_space<vmem>>, vector<1x128x128xf32>
    %132 = vector.shape_cast %131 : vector<1x128x128xf32> to vector<128x128xf32>
    %cst_83 = arith.constant dense<0.000000e+00> : vector<16x128xf32>
    %133 = tpu.matmul %130, %132, %cst_83 {dimension_numbers = #tpu.dot_dimension_numbers<[1], [0], [0], [1], [0, 0, 1, 1], [], []>} : vector<16x128xf32>, vector<128x128xf32>, vector<16x128xf32> -> vector<16x128xf32>
    %c9 = arith.constant 9 : index
    %c0_84 = arith.constant 0 : index
    %c0_85 = arith.constant 0 : index
    %134 = vector.load %arg4[%c9, %c0_84, %c0_85] : memref<10x1x128xf32, #tpu.memory_space<vmem>>, vector<1x1x128xf32>
    %135 = vector.shape_cast %134 : vector<1x1x128xf32> to vector<1x128xf32>
    %136 = vector.broadcast %135 : vector<1x128xf32> to vector<16x128xf32>
    %137 = arith.addf %133, %136 : vector<16x128xf32>
    %cst_86 = arith.constant 0.000000e+00 : f32
    %138 = vector.broadcast %cst_86 : f32 to vector<16x128xf32>
    %139 = arith.maximumf %137, %138 : vector<16x128xf32>
    %140 = arith.addf %139, %121 : vector<16x128xf32>
    %cst_87 = arith.constant 0.000000e+00 : f32
    %141 = vector.broadcast %cst_87 : f32 to vector<16x128xf32>
    %142 = arith.maximumf %140, %141 : vector<16x128xf32>
    %c0_88 = arith.constant 0 : index
    %c0_89 = arith.constant 0 : index
    %143 = vector.load %arg5[%c0_88, %c0_89] : memref<8x256xf32, #tpu.memory_space<vmem>>, vector<8x256xf32>
    %c0_90 = arith.constant 0 : index
    %c0_91 = arith.constant 0 : index
    %144 = vector.load %arg6[%c0_90, %c0_91] : memref<1x256xf32, #tpu.memory_space<vmem>>, vector<1x256xf32>
    %145 = vector.extract_strided_slice %142 {offsets = [0, 0], sizes = [8, 128], strides = [1, 1]} : vector<16x128xf32> to vector<8x128xf32>
    %cst_92 = arith.constant dense<0.000000e+00> : vector<128x256xf32>
    %146 = tpu.matmul %145, %143, %cst_92 {dimension_numbers = #tpu.dot_dimension_numbers<[0], [0], [1], [1], [0, 1, 1, 1], [], []>} : vector<8x128xf32>, vector<8x256xf32>, vector<128x256xf32> -> vector<128x256xf32>
    %147 = vector.extract_strided_slice %146 {offsets = [0, 0], sizes = [100, 256], strides = [1, 1]} : vector<128x256xf32> to vector<100x256xf32>
    %148 = vector.broadcast %144 : vector<1x256xf32> to vector<100x256xf32>
    %149 = arith.addf %147, %148 : vector<100x256xf32>
    %c0_93 = arith.constant 0 : index
    %c0_94 = arith.constant 0 : index
    %c0_95 = arith.constant 0 : index
    %150 = vector.load %arg7[%c0_93, %c0_94, %c0_95] : memref<2x100x256xf32, #tpu.memory_space<vmem>>, vector<1x100x256xf32>
    %151 = vector.shape_cast %150 : vector<1x100x256xf32> to vector<100x256xf32>
    %152 = vector.shape_cast %149 : vector<100x256xf32> to vector<1x100x256xf32>
    tpu.vector_store %arg7[%c0_93, %c0_94, %c0_95], %152 {strides = array<i32>} : memref<2x100x256xf32, #tpu.memory_space<vmem>>, vector<1x100x256xf32>,
    %153 = vector.extract_strided_slice %142 {offsets = [8, 0], sizes = [8, 128], strides = [1, 1]} : vector<16x128xf32> to vector<8x128xf32>
    %cst_96 = arith.constant dense<0.000000e+00> : vector<128x256xf32>
    %154 = tpu.matmul %153, %143, %cst_96 {dimension_numbers = #tpu.dot_dimension_numbers<[0], [0], [1], [1], [0, 1, 1, 1], [], []>} : vector<8x128xf32>, vector<8x256xf32>, vector<128x256xf32> -> vector<128x256xf32>
    %155 = vector.extract_strided_slice %154 {offsets = [0, 0], sizes = [100, 256], strides = [1, 1]} : vector<128x256xf32> to vector<100x256xf32>
    %156 = vector.broadcast %144 : vector<1x256xf32> to vector<100x256xf32>
    %157 = arith.addf %155, %156 : vector<100x256xf32>
    %c1_97 = arith.constant 1 : index
    %c0_98 = arith.constant 0 : index
    %c0_99 = arith.constant 0 : index
    %158 = vector.load %arg7[%c1_97, %c0_98, %c0_99] : memref<2x100x256xf32, #tpu.memory_space<vmem>>, vector<1x100x256xf32>
    %159 = vector.shape_cast %158 : vector<1x100x256xf32> to vector<100x256xf32>
    %160 = vector.shape_cast %157 : vector<100x256xf32> to vector<1x100x256xf32>
    tpu.vector_store %arg7[%c1_97, %c0_98, %c0_99], %160 {strides = array<i32>} : memref<2x100x256xf32, #tpu.memory_space<vmem>>, vector<1x100x256xf32>,
    return
  }
  func.func @transform_0(%arg0: i32) -> (i32, i32) {
    %c0_i32 = arith.constant 0 : i32
    %c0_i32_0 = arith.constant 0 : i32
    return %arg0, %c0_i32 : i32, i32
  }
  func.func @transform_1(%arg0: i32) -> (i32, i32, i32) {
    %c0_i32 = arith.constant 0 : i32
    %c0_i32_0 = arith.constant 0 : i32
    %c0_i32_1 = arith.constant 0 : i32
    %c0_i32_2 = arith.constant 0 : i32
    return %c0_i32, %c0_i32_0, %c0_i32_1 : i32, i32, i32
  }
  func.func @transform_2(%arg0: i32) -> (i32, i32, i32) {
    %c0_i32 = arith.constant 0 : i32
    %c0_i32_0 = arith.constant 0 : i32
    %c0_i32_1 = arith.constant 0 : i32
    %c0_i32_2 = arith.constant 0 : i32
    return %c0_i32, %c0_i32_0, %c0_i32_1 : i32, i32, i32
  }
  func.func @transform_3(%arg0: i32) -> (i32, i32, i32) {
    %c0_i32 = arith.constant 0 : i32
    %c0_i32_0 = arith.constant 0 : i32
    %c0_i32_1 = arith.constant 0 : i32
    %c0_i32_2 = arith.constant 0 : i32
    return %c0_i32, %c0_i32_0, %c0_i32_1 : i32, i32, i32
  }
  func.func @transform_4(%arg0: i32) -> (i32, i32) {
    %c0_i32 = arith.constant 0 : i32
    %c0_i32_0 = arith.constant 0 : i32
    %c0_i32_1 = arith.constant 0 : i32
    return %c0_i32, %c0_i32_0 : i32, i32
  }
  func.func @transform_5(%arg0: i32) -> (i32, i32) {
    %c0_i32 = arith.constant 0 : i32
    %c0_i32_0 = arith.constant 0 : i32
    %c0_i32_1 = arith.constant 0 : i32
    return %c0_i32, %c0_i32_0 : i32, i32
  }
  func.func @transform_6(%arg0: i32) -> (i32, i32, i32) {
    %c0_i32 = arith.constant 0 : i32
    %c0_i32_0 = arith.constant 0 : i32
    %c0_i32_1 = arith.constant 0 : i32
    return %arg0, %c0_i32, %c0_i32_0 : i32, i32, i32
  }
}

</mosaic_0001>

<bundles_post_ra>
// kernel: dark_gen_recons_tcn_forward.1
= control target key start
LH: loop header
LB: loop body
LE: loop exit
PB: predicated region body
PF: predicated region fallthrough
CT: control target
= control target key end

     0   :  { %11 = vsyncpa [#allocation3], 0  ;;  %s3243_s0 = inlined_call_operand.vmem [shape: f32[16,128], index: 0, kind: input, shape index: {}]   ;;  %s3244_s1 = inlined_call_operand.hbm [shape: f32[4,256,128], index: 1, kind: input, shape index: {}]   ;;  %s3245_s2 = inlined_call_operand.hbm [shape: f32[6,128,128], index: 2, kind: input, shape index: {}]   ;;  %s3246_s3 = inlined_call_operand.vmem [shape: f32[10,1,128], index: 3, kind: input, shape index: {}]   ;;  %s3247_s4 = inlined_call_operand.vmem [shape: f32[8,256], index: 4, kind: input, shape index: {}]   ;;  %s3248_s5 = inlined_call_operand.vmem [shape: f32[1,256], index: 5, kind: input, shape index: {}]   ;;  %s3249_s6 = inlined_call_operand.vmem [shape: f32[2,100,256], index: 6, kind: output, shape index: {}]  }
   0x1   :  { %12 = vsyncpa [#allocation5], 0  ;;  %s2735_s21 = smov [#allocation2]   ;;  %s2687_s25 = scalar_lea.hbm %s3244_s1, 16384 }
   0x2   :  { %s20_s22 = sshll.u32 %s2735_s21, 4  ;;  %p2688_p0 = scmp.ne.s32.totalorder %s3244_s1, %s2687_s25  ;;  %s21_s22 = int_to_ptr.vmem [resolvable:$true] %s20_s22 }
   0x3   :  { %p2691_p1 = scmp.lt.u32.totalorder %s2687_s25, %s3244_s1 }
   0x5   :  { %p2693_p2 = pnand %p2691_p1, %p2688_p0 }
   0x7   :  { %2696 = shalt.err (!%p2693_p2)
}
   0x8   :  { %s2697_s30 = scalar_lea.vmem %s21_s22, 16384  ;;  %p2702_p4 = scmp.lt.s32.totalorder %s21_s22, %s21_s22 }
   0x9   :  { %p2698_p3 = scmp.ne.s32.totalorder %s21_s22, %s2697_s30  ;;  %p2703_p5 = scmp.lt.s32.totalorder %s2697_s30, %s2697_s30 }
   0xb   :  { %p2704_p6 = por %p2703_p5, %p2702_p4 }
   0xd   :  { %p2705_p7 = pnand %p2704_p6, %p2698_p3 }
   0xf   :  { %2708 = shalt.err (!%p2705_p7)
}
  0x10   :  { %s2736_s7 = smov 128   ;;  %s2737_s8 = smov 8  }
  0x11   :  { %26 = dma.hbm_to_vmem [thread:$0]  %s3244_s1, 16384, %s21_s22, [#allocation3], %s2736_s7, %s2736_s7, %s2737_s8  }
  0x12   :  { %s2738_s11 = smov [#allocation4]   ;;  %s2709_s15 = scalar_lea.hbm %s3245_s2, 12288 }
  0x13   :  { %s32_s12 = sshll.u32 %s2738_s11, 4  ;;  %p2710_p8 = scmp.ne.s32.totalorder %s3245_s2, %s2709_s15  ;;  %s33_s12 = int_to_ptr.vmem [resolvable:$true] %s32_s12 }
  0x14   :  { %p2713_p9 = scmp.lt.u32.totalorder %s2709_s15, %s3245_s2 }
  0x16   :  { %p2715_p10 = pnand %p2713_p9, %p2710_p8 }
  0x18   :  { %2718 = shalt.err (!%p2715_p10)
}
  0x19   :  { %s2719_s20 = scalar_lea.vmem %s33_s12, 12288  ;;  %p2724_p12 = scmp.lt.s32.totalorder %s33_s12, %s33_s12 }
  0x1a   :  { %p2720_p11 = scmp.ne.s32.totalorder %s33_s12, %s2719_s20  ;;  %p2725_p13 = scmp.lt.s32.totalorder %s2719_s20, %s2719_s20 }
  0x1c   :  { %p2726_p0 = por %p2725_p13, %p2724_p12 }
  0x1e   :  { %p2727_p1 = pnand %p2726_p0, %p2720_p11 }
  0x20   :  { %2730 = shalt.err (!%p2727_p1)
}
  0x21   :  { %38 = dma.hbm_to_vmem [thread:$0]  %s3245_s2, 12288, %s33_s12, [#allocation5], %s2736_s7, %s2736_s7, %s2737_s8  }
  0x22   :  { %2731 = dma.done.wait [#allocation3], 16384  }
  0x23   :  { %2732 = vsyncadd [#allocation3], 4294950912 }
  0x24   :  { %2733 = dma.done.wait [#allocation5], 12288  }
  0x25   :  { %2734 = vsyncadd [#allocation5], 4294955008  ;;  %v107_v0 = vld [vmem:[#allocation2 + $0x80] sm:$0xff]  ;;  %v108_v1 = vld [vmem:[#allocation2 + $0x88] sm:$0xff]  ;;  %v53_v3 = vlaneseq  ;;  %vm1246_vm6 = vcmask 64512  }
  0x26   :  { %v91_v2 = vld [vmem:[#allocation2] sm:$0xff]  ;;  %v2362_v4 = vpack.c.bf16 %v108_v1, %v107_v0  ;;  %v92_v5 = vld [vmem:[#allocation2 + $0x8] sm:$0xff]  ;;  %v109_v6 = vld [vmem:[#allocation2 + $0x90] sm:$0xff] }
  0x27   :  { %v110_v7 = vld [vmem:[#allocation2 + $0x98] sm:$0xff]  ;;  %v2364_v8 = vpack.c.bf16 %v92_v5, %v91_v2  ;;  %v93_v10 = vld [vmem:[#allocation2 + $0x10] sm:$0xff]  ;;  %v111_v12 = vld [vmem:[#allocation2 + $0xa0] sm:$0xff]  ;;  %v2799_v15 = vshrl.u32 %v53_v3, 7 }
  0x28   :  { %v2366_v9 = vpack.c.bf16 %v110_v7, %v109_v6  ;;  %v94_v11 = vld [vmem:[#allocation2 + $0x18] sm:$0xff]  ;;  %2363 = vmatprep.subr.bf16.mxu0 %v2362_v4  ;;  %v112_v13 = vld [vmem:[#allocation2 + $0xa8] sm:$0xff]  ;;  %v95_v17 = vld [vmem:[#allocation2 + $0x20] sm:$0xff] }
  0x29   :  { %2365 = vmatpush3.bf16.msra.mxu0 %v2364_v8  ;;  %v2368_v14 = vpack.c.bf16 %v94_v11, %v93_v10  ;;  %v2370_v16 = vpack.c.bf16 %v112_v13, %v111_v12  ;;  %v96_v18 = vld [vmem:[#allocation2 + $0x28] sm:$0xff]  ;;  %v113_v19 = vld [vmem:[#allocation2 + $0xb0] sm:$0xff]  ;;  %v114_v20 = vld [vmem:[#allocation2 + $0xb8] sm:$0xff]  ;;  %v60_v22 = vand.u32 7, %v2799_v15  ;;  %vm86_vm0 = vcmp.lt.s32.totalorder %v2799_v15, 1 }
  0x2a   :  { %2367 = vmatprep.subr.bf16.mxu0 %v2366_v9  ;;  %v2372_v21 = vpack.c.bf16 %v96_v18, %v95_v17  ;;  %v2374_v23 = vpack.c.bf16 %v114_v20, %v113_v19  ;;  %v97_v24 = vld [vmem:[#allocation2 + $0x30] sm:$0xff]  ;;  %v98_v25 = vld [vmem:[#allocation2 + $0x38] sm:$0xff]  ;;  %v115_v26 = vld [vmem:[#allocation2 + $0xc0] sm:$0xff]  ;;  %v2830_v17 = vadd.s32 8, %v2799_v15  ;;  %vm337_vm3 = vcmp.lt.s32.totalorder %v2799_v15, 2 }
  0x2b   :  { %v116_v27 = vld [vmem:[#allocation2 + $0xc8] sm:$0xff]  ;;  %v2805_v28 = vld [vmem:[%s3243_s0] sm:$0xff]  ;;  %v2376_v35 = vpack.c.bf16 %v98_v25, %v97_v24  ;;  %v117_v36 = vld [vmem:[#allocation2 + $0xd0] sm:$0xff]  ;;  %vm2816_vm1 = vcmp.ge.s32.totalorder %v60_v22, 1  ;;  %vm2872_vm4 = vcmp.ge.s32.totalorder %v60_v22, 2 }
  0x2c   :  { %v99_v29 = vld [vmem:[#allocation2 + $0x40] sm:$0xff]  ;;  %v100_v30 = vld [vmem:[#allocation2 + $0x48] sm:$0xff]  ;;  %v84_v32 = vrot.slane %v2805_v28, 7  ;;  %v232_v42 = vld [vmem:[#allocation2 + $0x190] sm:$0xff]  ;;  %v2378_v43 = vpack.c.bf16 %v116_v27, %v115_v26  ;;  %v67_v19 = vand.u32 7, %v2830_v17 }
  0x2d   :  { %2369 = vmatpush3.bf16.msra.mxu0 %v2368_v14  ;;  %v2810_v31 = vld [vmem:[%s3243_s0 + $0x8] sm:$0xff]  ;;  %v230_v33 = vld [vmem:[#allocation2 + $0x180] sm:$0xff]  ;;  %v233_v45 = vld [vmem:[#allocation2 + $0x198] sm:$0xff]  ;;  %v2380_v54 = vpack.c.bf16 %v100_v30, %v99_v29 }
  0x2e   :  { %2371 = vmatprep.subr.bf16.mxu0 %v2370_v16  ;;  %v231_v34 = vld [vmem:[#allocation2 + $0x188] sm:$0xff]  ;;  %v85_v38 = vrot.slane %v2810_v31, 7  ;;  %v214_v40 = vld [vmem:[#allocation2 + $0x100] sm:$0xff]  ;;  %v216_v46 = vld [vmem:[#allocation2 + $0x110] sm:$0xff]  ;;  %v2398_v50 = vpack.c.bf16 %v233_v45, %v232_v42  ;;  %vm2835_vm2 = vcmp.ge.s32.totalorder %v67_v19, 1  ;;  %vm2882_vm5 = vcmp.ge.s32.totalorder %v67_v19, 2 }
  0x2f   :  { %v2394_v39 = vpack.c.bf16 %v231_v34, %v230_v33  ;;  %v215_v41 = vld [vmem:[#allocation2 + $0x108] sm:$0xff]  ;;  %v217_v47 = vld [vmem:[#allocation2 + $0x118] sm:$0xff]  ;;  %v234_v51 = vld [vmem:[#allocation2 + $0x1a0] sm:$0xff] }
  0x30   :  { %v2396_v44 = vpack.c.bf16 %v215_v41, %v214_v40  ;;  %v118_v48 = vld [vmem:[#allocation2 + $0xd8] sm:$0xff]  ;;  %v88_v49 = vsel %vm86_vm0, %v85_v38, %v84_v32  ;;  %v235_v52 = vld [vmem:[#allocation2 + $0x1a8] sm:$0xff]  ;;  %v2400_v53 = vpack.c.bf16 %v217_v47, %v216_v46  ;;  %v101_v55 = vld [vmem:[#allocation2 + $0x50] sm:$0xff] }
  0x31   :  { %2373 = vmatpush3.bf16.msra.mxu0 %v2372_v21  ;;  %2395 = vmatprep.subr.bf16.mxu1 %v2394_v39  ;;  %v2402_v56 = vpack.c.bf16 %v235_v52, %v234_v51  ;;  %v218_v57 = vld [vmem:[#allocation2 + $0x120] sm:$0xff]  ;;  %v219_v58 = vld [vmem:[#allocation2 + $0x128] sm:$0xff]  ;;  %v2382_v59 = vpack.c.bf16 %v118_v48, %v117_v36  ;;  %v102_v60 = vld [vmem:[#allocation2 + $0x58] sm:$0xff]  ;;  %v87_v21 = vsel %vm86_vm0, %v84_v32, %v85_v38 }
  0x32   :  { %2375 = vmatprep.subr.bf16.mxu0 %v2374_v23  ;;  %1808 = vmatprep.mubr.msk.f32.mxu0 %vm2816_vm1, %v88_v49  ;;  %v236_v61 = vld [vmem:[#allocation2 + $0x1b0] sm:$0xff]  ;;  %v237_v62 = vld [vmem:[#allocation2 + $0x1b8] sm:$0xff]  ;;  %v119_v63 = vld [vmem:[#allocation2 + $0xe0] sm:$0xff]  ;;  %v2404_v1 = vpack.c.bf16 %v219_v58, %v218_v57  ;;  %v2384_v2 = vpack.c.bf16 %v102_v60, %v101_v55 }
  0x33   :  { %2397 = vmatpush3.bf16.msra.mxu1 %v2396_v44  ;;  %v120_v0 = vld [vmem:[#allocation2 + $0xe8] sm:$0xff]  ;;  %v2406_v3 = vpack.c.bf16 %v237_v62, %v236_v61  ;;  %v220_v4 = vld [vmem:[#allocation2 + $0x130] sm:$0xff]  ;;  %v221_v5 = vld [vmem:[#allocation2 + $0x138] sm:$0xff] }
  0x34   :  { %2399 = vmatprep.subr.bf16.mxu1 %v2398_v50  ;;  %v2386_v6 = vpack.c.bf16 %v120_v0, %v119_v63  ;;  %v103_v7 = vld [vmem:[#allocation2 + $0x60] sm:$0xff]  ;;  %v104_v8 = vld [vmem:[#allocation2 + $0x68] sm:$0xff]  ;;  %v121_v9 = vld [vmem:[#allocation2 + $0xf0] sm:$0xff]  ;;  %v2408_v11 = vpack.c.bf16 %v221_v5, %v220_v4 }
  0x35   :  { %2377 = vmatpush3.bf16.msra.mxu0 %v2376_v35  ;;  %v122_v10 = vld [vmem:[#allocation2 + $0xf8] sm:$0xff]  ;;  %v2388_v12 = vpack.c.bf16 %v104_v8, %v103_v7  ;;  %v105_v14 = vld [vmem:[#allocation2 + $0x70] sm:$0xff]  ;;  %v238_v23 = vld [vmem:[#allocation2 + $0x1c0] sm:$0xff] }
  0x36   :  { %2379 = vmatprep.subr.bf16.mxu0 %v2378_v43  ;;  %v2390_v13 = vpack.c.bf16 %v122_v10, %v121_v9  ;;  %v106_v16 = vld [vmem:[#allocation2 + $0x78] sm:$0xff]  ;;  %v239_v24 = vld [vmem:[#allocation2 + $0x1c8] sm:$0xff]  ;;  %v222_v26 = vld [vmem:[#allocation2 + $0x140] sm:$0xff] }
  0x37   :  { %2401 = vmatpush3.bf16.msra.mxu1 %v2400_v53  ;;  %v2392_v18 = vpack.c.bf16 %v106_v16, %v105_v14  ;;  %v2410_v25 = vpack.c.bf16 %v239_v24, %v238_v23  ;;  %v223_v27 = vld [vmem:[#allocation2 + $0x148] sm:$0xff]  ;;  %v240_v30 = vld [vmem:[#allocation2 + $0x1d0] sm:$0xff]  ;;  %v241_v33 = vld [vmem:[#allocation2 + $0x1d8] sm:$0xff] }
  0x38   :  { %2403 = vmatprep.subr.bf16.mxu1 %v2402_v56  ;;  %v2412_v29 = vpack.c.bf16 %v223_v27, %v222_v26  ;;  %v2414_v34 = vpack.c.bf16 %v241_v33, %v240_v30  ;;  %v224_v35 = vld [vmem:[#allocation2 + $0x150] sm:$0xff]  ;;  %v225_v32 = vld [vmem:[#allocation2 + $0x158] sm:$0xff]  ;;  %v242_v38 = vld [vmem:[#allocation2 + $0x1e0] sm:$0xff] }
  0x39   :  { %2381 = vmatpush3.bf16.msra.mxu0 %v2380_v54  ;;  %v2416_v36 = vpack.c.bf16 %v225_v32, %v224_v35  ;;  %v243_v39 = vld [vmem:[#allocation2 + $0x1e8] sm:$0xff]  ;;  %v226_v41 = vld [vmem:[#allocation2 + $0x160] sm:$0xff]  ;;  %v244_v44 = vld [vmem:[#allocation2 + $0x1f0] sm:$0xff] }
  0x3a   :  { %2383 = vmatprep.subr.bf16.mxu0 %v2382_v59  ;;  %v2418_v40 = vpack.c.bf16 %v243_v39, %v242_v38  ;;  %v227_v42 = vld [vmem:[#allocation2 + $0x168] sm:$0xff]  ;;  %v245_v45 = vld [vmem:[#allocation2 + $0x1f8] sm:$0xff]  ;;  %v228_v47 = vld [vmem:[#allocation2 + $0x170] sm:$0xff] }
  0x3b   :  { %2405 = vmatpush3.bf16.msra.mxu1 %v2404_v1  ;;  %v2420_v43 = vpack.c.bf16 %v227_v42, %v226_v41  ;;  %v2422_v46 = vpack.c.bf16 %v245_v45, %v244_v44  ;;  %v229_v48 = vld [vmem:[#allocation2 + $0x178] sm:$0xff]  ;;  %v359_v50 = vld [vmem:[#allocation2 + $0x280] sm:$0xff]  ;;  %v360_v51 = vld [vmem:[#allocation2 + $0x288] sm:$0xff] }
  0x3c   :  { %2407 = vmatprep.subr.bf16.mxu1 %v2406_v3  ;;  %v2424_v49 = vpack.c.bf16 %v229_v48, %v228_v47  ;;  %v343_v52 = vld [vmem:[#allocation2 + $0x200] sm:$0xff]  ;;  %v2426_v53 = vpack.c.bf16 %v360_v51, %v359_v50  ;;  %v344_v54 = vld [vmem:[#allocation2 + $0x208] sm:$0xff]  ;;  %v361_v55 = vld [vmem:[#allocation2 + $0x290] sm:$0xff] }
  0x3d   :  { %2385 = vmatpush3.bf16.msra.mxu0 %v2384_v2  ;;  %v362_v56 = vld [vmem:[#allocation2 + $0x298] sm:$0xff]  ;;  %v2428_v57 = vpack.c.bf16 %v344_v54, %v343_v52  ;;  %v345_v59 = vld [vmem:[#allocation2 + $0x210] sm:$0xff]  ;;  %v363_v61 = vld [vmem:[#allocation2 + $0x2a0] sm:$0xff] }
  0x3e   :  { %2387 = vmatprep.subr.bf16.mxu0 %v2386_v6  ;;  %v2430_v58 = vpack.c.bf16 %v362_v56, %v361_v55  ;;  %v346_v60 = vld [vmem:[#allocation2 + $0x218] sm:$0xff]  ;;  %v364_v62 = vld [vmem:[#allocation2 + $0x2a8] sm:$0xff]  ;;  %v347_v1 = vld [vmem:[#allocation2 + $0x220] sm:$0xff] }
  0x3f   :  { %2409 = vmatpush3.bf16.msra.mxu1 %v2408_v11  ;;  %v2432_v63 = vpack.c.bf16 %v346_v60, %v345_v59  ;;  %v2434_v0 = vpack.c.bf16 %v364_v62, %v363_v61  ;;  %v348_v2 = vld [vmem:[#allocation2 + $0x228] sm:$0xff]  ;;  %v1807_v5 = vld [vmem:[%s3246_s3] ss:$0 sm:$0xff]  ;;  %v365_v24 = vld [vmem:[#allocation2 + $0x2b0] sm:$0xff] }
  0x40   :  { %2411 = vmatprep.subr.bf16.mxu1 %v2410_v25  ;;  %v2436_v3 = vpack.c.bf16 %v348_v2, %v347_v1  ;;  %v366_v25 = vld [vmem:[#allocation2 + $0x2b8] sm:$0xff]  ;;  %v349_v27 = vld [vmem:[#allocation2 + $0x230] sm:$0xff]  ;;  %v367_v33 = vld [vmem:[#allocation2 + $0x2c0] sm:$0xff] }
  0x41   :  { %2389 = vmatpush3.bf16.msra.mxu0 %v2388_v12  ;;  %v2438_v26 = vpack.c.bf16 %v366_v25, %v365_v24  ;;  %v351_v32 = vld [vmem:[#allocation2 + $0x240] sm:$0xff]  ;;  %v369_v38 = vld [vmem:[#allocation2 + $0x2d0] sm:$0xff]  ;;  %v370_v20 = vld [vmem:[#allocation2 + $0x2d8] sm:$0xff] }
  0x42   :  { %2391 = vmatprep.subr.bf16.mxu0 %v2390_v13  ;;  %v2446_v39 = vpack.c.bf16 %v370_v20, %v369_v38  ;;  %v354_v41 = vld [vmem:[#allocation2 + $0x258] sm:$0xff]  ;;  %v372_v44 = vld [vmem:[#allocation2 + $0x2e8] sm:$0xff]  ;;  %v357_v52 = vld [vmem:[#allocation2 + $0x270] sm:$0xff] }
  0x43   :  { %2413 = vmatpush3.bf16.msra.mxu1 %v2412_v29  ;;  %v350_v29 = vld [vmem:[#allocation2 + $0x238] sm:$0xff]  ;;  %v356_v47 = vld [vmem:[#allocation2 + $0x268] sm:$0xff]  ;;  %v483_v55 = vld [vmem:[#allocation2 + $0x380] sm:$0xff] }
  0x44   :  { %2415 = vmatprep.subr.bf16.mxu1 %v2414_v34  ;;  %v2440_v30 = vpack.c.bf16 %v350_v29, %v349_v27  ;;  %v368_v34 = vld [vmem:[#allocation2 + $0x2c8] sm:$0xff]  ;;  %v374_v50 = vld [vmem:[#allocation2 + $0x2f8] sm:$0xff]  ;;  %v485_v60 = vld [vmem:[#allocation2 + $0x390] sm:$0xff] }
  0x45   :  { %2393 = vmatpush3.bf16.msra.mxu0 %v2392_v18  ;;  %v2442_v35 = vpack.c.bf16 %v368_v34, %v367_v33  ;;  %v484_v56 = vld [vmem:[#allocation2 + $0x388] sm:$0xff]  ;;  %v486_v61 = vld [vmem:[#allocation2 + $0x398] sm:$0xff]  ;;  %v487_v2 = vld [vmem:[#allocation2 + $0x3a0] sm:$0xff] }
  0x46   :  { %2427 = vmatprep.subr.bf16.mxu0 %v2426_v53  ;;  %v358_v53 = vld [vmem:[#allocation2 + $0x278] sm:$0xff]  ;;  %v468_v59 = vld [vmem:[#allocation2 + $0x308] sm:$0xff]  ;;  %v475_v19 = vld [vmem:[#allocation2 + $0x340] sm:$0xff] }
  0x47   :  { %2417 = vmatpush3.bf16.msra.mxu1 %v2416_v36  ;;  %v352_v36 = vld [vmem:[#allocation2 + $0x248] sm:$0xff]  ;;  %v2456_v54 = vpack.c.bf16 %v358_v53, %v357_v52  ;;  %v470_v1 = vld [vmem:[#allocation2 + $0x318] sm:$0xff]  ;;  %v479_v52 = vld [vmem:[#allocation2 + $0x360] sm:$0xff] }
  0x48   :  { %195 = vmatmul.mubr.f32.vlgmr.msra.gmra.mrb[0].mxu0 %v2805_v28  ;;  %2419 = vmatprep.subr.bf16.mxu1 %v2418_v40  ;;  %v2444_v37 = vpack.c.bf16 %v352_v36, %v351_v32  ;;  %v353_v40 = vld [vmem:[#allocation2 + $0x250] sm:$0xff]  ;;  %v480_v53 = vld [vmem:[#allocation2 + $0x368] sm:$0xff] }
  0x49   :  { %1809 = vmatprep.mubr.msk.f32.mxu0 %vm2835_vm2, %v87_v21  ;;  %2429 = vmatpush3.bf16.msra.mxu0 %v2428_v57  ;;  %v2448_v42 = vpack.c.bf16 %v354_v41, %v353_v40  ;;  %v467_v57 = vld [vmem:[#allocation2 + $0x300] sm:$0xff]  ;;  %v492_v40 = vld [vmem:[#allocation2 + $0x3c8] sm:$0xff] }
  0x4a   :  { %2431 = vmatprep.subr.bf16.mxu0 %v2430_v58  ;;  %v2458_v58 = vpack.c.bf16 %v484_v56, %v483_v55  ;;  %v2460_v62 = vpack.c.bf16 %v468_v59, %v467_v57  ;;  %v476_v41 = vld [vmem:[#allocation2 + $0x348] sm:$0xff]  ;;  %v497_v55 = vld [vmem:[#allocation2 + $0x3f0] sm:$0xff]  ;;  %v498_v56 = vld [vmem:[#allocation2 + $0x3f8] sm:$0xff] }
  0x4b   :  { %2421 = vmatpush3.bf16.msra.mxu1 %v2420_v43  ;;  %v371_v43 = vld [vmem:[#allocation2 + $0x2e0] sm:$0xff]  ;;  %v2486_v57 = vpack.c.bf16 %v498_v56, %v497_v55  ;;  %v482_v59 = vld [vmem:[#allocation2 + $0x378] sm:$0xff] }
  0x4c   :  { %200 = vmatmul.mubr.f32.gmra.mrb[2].mxu0 %v2810_v31  ;;  %2423 = vmatprep.subr.bf16.mxu1 %v2422_v46  ;;  %v2450_v45 = vpack.c.bf16 %v372_v44, %v371_v43  ;;  %v355_v46 = vld [vmem:[#allocation2 + $0x260] sm:$0xff]  ;;  %v493_v43 = vld [vmem:[#allocation2 + $0x3d0] sm:$0xff]  ;;  %v494_v44 = vld [vmem:[#allocation2 + $0x3d8] sm:$0xff] }
  0x4d   :  { %2433 = vmatpush3.bf16.msra.mxu0 %v2432_v63  ;;  %v2452_v48 = vpack.c.bf16 %v356_v47, %v355_v46  ;;  %v2462_v63 = vpack.c.bf16 %v486_v61, %v485_v60  ;;  %v477_v46 = vld [vmem:[#allocation2 + $0x350] sm:$0xff]  ;;  %v478_v47 = vld [vmem:[#allocation2 + $0x358] sm:$0xff]  ;;  %v588_v61 = vld [vmem:[#allocation4] sm:$0xff] }
  0x4e   :  { %2435 = vmatprep.subr.bf16.mxu0 %v2434_v0  ;;  %v469_v0 = vld [vmem:[#allocation2 + $0x310] sm:$0xff]  ;;  %v701_v55 = vld [vmem:[#allocation4 + $0xd8] sm:$0xff] }
  0x4f   :  { %2425 = vmatpush3.bf16.msra.mxu1 %v2424_v49  ;;  %v373_v49 = vld [vmem:[#allocation2 + $0x2f0] sm:$0xff] }
  0x50   :  { %v2454_v51 = vpack.c.bf16 %v374_v50, %v373_v49  ;;  %2459 = vmatprep.subr.bf16.mxu1 %v2458_v58  ;;  %v495_v49 = vld [vmem:[#allocation2 + $0x3e0] sm:$0xff]  ;;  %v496_v50 = vld [vmem:[#allocation2 + $0x3e8] sm:$0xff]  ;;  %v481_v58 = vld [vmem:[#allocation2 + $0x370] sm:$0xff] }
  0x51   :  { %2437 = vmatpush3.bf16.msra.mxu0 %v2436_v3  ;;  %v488_v3 = vld [vmem:[#allocation2 + $0x3a8] sm:$0xff]  ;;  %v2488_v60 = vpack.c.bf16 %v482_v59, %v481_v58 }
  0x52   :  { %2439 = vmatprep.subr.bf16.mxu0 %v2438_v26  ;;  %v703_v58 = vld [vmem:[#allocation4 + $0xe8] sm:$0xff] }
  0x55   :  { %2441 = vmatpush3.bf16.msra.mxu0 %v2440_v30 }
  0x56   :  { %2443 = vmatprep.subr.bf16.mxu0 %v2442_v35 }
  0x59   :  { %2445 = vmatpush3.bf16.msra.mxu0 %v2444_v37  ;;  %v602_v37 = vld [vmem:[#allocation4 + $0x70] sm:$0xff] }
  0x5a   :  { %2447 = vmatprep.subr.bf16.mxu0 %v2446_v39  ;;  %v491_v39 = vld [vmem:[#allocation2 + $0x3c0] sm:$0xff] }
  0x5b   :  { %v2474_v17 = vpack.c.bf16 %v492_v40, %v491_v39  ;;  %v603_v40 = vld [vmem:[#allocation4 + $0x78] sm:$0xff] }
  0x5d   :  { %2449 = vmatpush3.bf16.msra.mxu0 %v2448_v42  ;;  %v2476_v42 = vpack.c.bf16 %v476_v41, %v475_v19  ;;  %v691_v19 = vld [vmem:[#allocation4 + $0x88] sm:$0xff]  ;;  %v692_v41 = vld [vmem:[#allocation4 + $0x90] sm:$0xff] }
  0x5e   :  { %2451 = vmatprep.subr.bf16.mxu0 %v2450_v45  ;;  %v2478_v45 = vpack.c.bf16 %v494_v44, %v493_v43  ;;  %v693_v43 = vld [vmem:[#allocation4 + $0x98] sm:$0xff] }
  0x5f   :  { %v2526_v44 = vpack.c.bf16 %v693_v43, %v692_v41  ;;  %v809_v41 = vld [vmem:[#allocation4 + $0x168] sm:$0xff]  ;;  %v810_v43 = vld [vmem:[#allocation4 + $0x170] sm:$0xff] }
  0x61   :  { %2453 = vmatpush3.bf16.msra.mxu0 %v2452_v48  ;;  %v2480_v48 = vpack.c.bf16 %v478_v47, %v477_v46  ;;  %v695_v46 = vld [vmem:[#allocation4 + $0xa8] sm:$0xff] }
  0x62   :  { %2455 = vmatprep.subr.bf16.mxu0 %v2454_v51  ;;  %v2482_v51 = vpack.c.bf16 %v496_v50, %v495_v49  ;;  %v697_v49 = vld [vmem:[#allocation4 + $0xb8] sm:$0xff] }
  0x65   :  { %2457 = vmatpush3.bf16.msra.mxu0 %v2456_v54  ;;  %v2484_v54 = vpack.c.bf16 %v480_v53, %v479_v52  ;;  %v699_v52 = vld [vmem:[#allocation4 + $0xc8] sm:$0xff] }
 0x11b   :  { %v1924_v4 = vpop.f32.mrb[0].mxu0 }
 0x11c   :  { %v1925_v6 = vpop.f32.mrb[1].mxu0 }
 0x11d   :  { %v1926_v7 = vadd.f32 %v1925_v6, %v1924_v4  ;;  %v2464_v4 = vpack.c.bf16 %v470_v1, %v469_v0  ;;  %v471_v6 = vld [vmem:[#allocation2 + $0x320] sm:$0xff]  ;;  %v591_v1 = vld [vmem:[#allocation4 + $0x18] sm:$0xff] }
 0x11f   :  { %v197_v8 = vadd.f32 %v1926_v7, %v1807_v5  ;;  %v1927_v9 = vpop.f32.mrb[2].mxu0  ;;  %v472_v7 = vld [vmem:[#allocation2 + $0x328] sm:$0xff] }
 0x120   :  { %v1928_v10 = vpop.f32.mrb[3].mxu0 }
 0x121   :  { %v1929_v11 = vadd.f32 %v1928_v10, %v1927_v9  ;;  %v205_v12 = vmax.f32 %v197_v8, 0.0  ;;  %v489_v8 = vld [vmem:[#allocation2 + $0x3b0] sm:$0xff]  ;;  %v490_v9 = vld [vmem:[#allocation2 + $0x3b8] sm:$0xff]  ;;  %v2468_v10 = vpack.c.bf16 %v472_v7, %v471_v6 }
 0x122   :  { %v594_v6 = vld [vmem:[#allocation4 + $0x30] sm:$0xff]  ;;  %v595_v7 = vld [vmem:[#allocation4 + $0x38] sm:$0xff] }
 0x123   :  { %v202_v13 = vadd.f32 %v1929_v11, %v1807_v5  ;;  %v207_v16 = vrot.slane %v205_v12, 7  ;;  %v2466_v5 = vpack.c.bf16 %v488_v3, %v487_v2  ;;  %v2470_v11 = vpack.c.bf16 %v490_v9, %v489_v8  ;;  %v592_v3 = vld [vmem:[#allocation4 + $0x20] sm:$0xff] }
 0x124   :  { %v2502_v8 = vpack.c.bf16 %v595_v7, %v594_v6 }
 0x125   :  { %v206_v14 = vmax.f32 %v202_v13, 0.0  ;;  %v474_v13 = vld [vmem:[#allocation2 + $0x338] sm:$0xff] }
 0x127   :  { %v208_v18 = vrot.slane %v206_v14, 7 }
 0x129   :  { %v210_v21 = vsel %vm86_vm0, %v208_v18, %v207_v16  ;;  %v209_v23 = vsel %vm86_vm0, %v207_v16, %v208_v18  ;;  %v1811_v18 = vld [vmem:[%s3246_s3 + $0x1] ss:$0 sm:$0xff] }
 0x12a   :  { %1812 = vmatprep.mubr.msk.f32.mxu1 %vm2816_vm1, %v210_v21 }
 0x12b   :  { %319 = vmatmul.mubr.f32.vlgmr.msra.gmra.mrb[0].mxu1 %v205_v12  ;;  %v473_v12 = vld [vmem:[#allocation2 + $0x330] sm:$0xff] }
 0x12c   :  { %1813 = vmatprep.mubr.msk.f32.mxu1 %vm2835_vm2, %v209_v23  ;;  %2461 = vmatpush3.bf16.msra.mxu1 %v2460_v62  ;;  %v589_v62 = vld [vmem:[#allocation4 + $0x8] sm:$0xff] }
 0x12d   :  { %2463 = vmatprep.subr.bf16.mxu1 %v2462_v63  ;;  %v590_v63 = vld [vmem:[#allocation4 + $0x10] sm:$0xff]  ;;  %v2490_v0 = vpack.c.bf16 %v589_v62, %v588_v61  ;;  %v1819_v61 = vld [vmem:[%s3246_s3 + $0x3] ss:$0 sm:$0xff] }
 0x12e   :  { %v2494_v2 = vpack.c.bf16 %v591_v1, %v590_v63 }
 0x12f   :  { %324 = vmatmul.mubr.f32.gmra.mrb[2].mxu1 %v206_v14  ;;  %v2472_v14 = vpack.c.bf16 %v474_v13, %v473_v12  ;;  %2491 = vmatprep.subr.bf16.mxu0 %v2490_v0 }
 0x130   :  { %2465 = vmatpush3.bf16.msra.mxu1 %v2464_v4  ;;  %v593_v4 = vld [vmem:[#allocation4 + $0x28] sm:$0xff] }
 0x131   :  { %2467 = vmatprep.subr.bf16.mxu1 %v2466_v5  ;;  %v2498_v5 = vpack.c.bf16 %v593_v4, %v592_v3 }
 0x134   :  { %2469 = vmatpush3.bf16.msra.mxu1 %v2468_v10  ;;  %v1815_v10 = vld [vmem:[%s3246_s3 + $0x2] ss:$0 sm:$0xff] }
 0x135   :  { %2471 = vmatprep.subr.bf16.mxu1 %v2470_v11 }
 0x138   :  { %2473 = vmatpush3.bf16.msra.mxu1 %v2472_v14 }
 0x139   :  { %2475 = vmatprep.subr.bf16.mxu1 %v2474_v17  ;;  %v690_v17 = vld [vmem:[#allocation4 + $0x80] sm:$0xff] }
 0x13c   :  { %2477 = vmatpush3.bf16.msra.mxu1 %v2476_v42  ;;  %v2522_v42 = vpack.c.bf16 %v691_v19, %v690_v17  ;;  %v808_v19 = vld [vmem:[#allocation4 + $0x160] sm:$0xff] }
 0x13d   :  { %2479 = vmatprep.subr.bf16.mxu1 %v2478_v45  ;;  %v694_v45 = vld [vmem:[#allocation4 + $0xa0] sm:$0xff] }
 0x13e   :  { %v2530_v47 = vpack.c.bf16 %v695_v46, %v694_v45  ;;  %v898_v46 = vld [vmem:[#allocation4 + $0x180] sm:$0xff] }
 0x140   :  { %2481 = vmatpush3.bf16.msra.mxu1 %v2480_v48  ;;  %v696_v48 = vld [vmem:[#allocation4 + $0xb0] sm:$0xff] }
 0x141   :  { %2483 = vmatprep.subr.bf16.mxu1 %v2482_v51  ;;  %v2534_v50 = vpack.c.bf16 %v697_v49, %v696_v48  ;;  %v698_v51 = vld [vmem:[#allocation4 + $0xc0] sm:$0xff]  ;;  %v900_v48 = vld [vmem:[#allocation4 + $0x190] sm:$0xff] }
 0x142   :  { %v2538_v53 = vpack.c.bf16 %v699_v52, %v698_v51  ;;  %v902_v52 = vld [vmem:[#allocation4 + $0x1a0] sm:$0xff] }
 0x144   :  { %2485 = vmatpush3.bf16.msra.mxu1 %v2484_v54  ;;  %v700_v54 = vld [vmem:[#allocation4 + $0xd0] sm:$0xff] }
 0x145   :  { %2487 = vmatprep.subr.bf16.mxu1 %v2486_v57  ;;  %v2542_v56 = vpack.c.bf16 %v701_v55, %v700_v54  ;;  %v702_v57 = vld [vmem:[#allocation4 + $0xe0] sm:$0xff]  ;;  %v904_v55 = vld [vmem:[#allocation4 + $0x1b0] sm:$0xff] }
 0x146   :  { %v2546_v59 = vpack.c.bf16 %v703_v58, %v702_v57  ;;  %v906_v58 = vld [vmem:[#allocation4 + $0x1c0] sm:$0xff] }
 0x148   :  { %2489 = vmatpush3.bf16.msra.mxu1 %v2488_v60 }
 0x149   :  { %2523 = vmatprep.subr.bf16.mxu1 %v2522_v42 }
 0x1fe   :  { %v1962_v16 = vpop.f32.mrb[0].mxu1 }
 0x1ff   :  { %v1963_v21 = vpop.f32.mrb[1].mxu1 }
 0x200   :  { %v1964_v23 = vadd.f32 %v1963_v21, %v1962_v16 }
 0x202   :  { %v321_v24 = vadd.f32 %v1964_v23, %v1811_v18  ;;  %v1965_v25 = vpop.f32.mrb[2].mxu1 }
 0x203   :  { %v1966_v26 = vpop.f32.mrb[3].mxu1 }
 0x204   :  { %v329_v27 = vmax.f32 %v321_v24, 0.0  ;;  %v1967_v29 = vadd.f32 %v1966_v26, %v1965_v25 }
 0x206   :  { %v331_v30 = vadd.f32 %v329_v27, %v2805_v28  ;;  %v326_v33 = vadd.f32 %v1967_v29, %v1811_v18 }
 0x208   :  { %v330_v34 = vmax.f32 %v326_v33, 0.0  ;;  %v2864_v35 = vmax.f32 %v331_v30, 0.0  ;;  %v596_v30 = vld [vmem:[#allocation4 + $0x40] sm:$0xff]  ;;  %v597_v33 = vld [vmem:[#allocation4 + $0x48] sm:$0xff] }
 0x20a   :  { %v332_v32 = vadd.f32 %v330_v34, %v2810_v31  ;;  %v335_v38 = vrot.slane %v2864_v35, 6  ;;  %v2506_v34 = vpack.c.bf16 %v597_v33, %v596_v30  ;;  %v2518_v31 = vpack.c.bf16 %v603_v40, %v602_v37  ;;  %v804_v30 = vld [vmem:[#allocation4 + $0x140] sm:$0xff]  ;;  %v805_v33 = vld [vmem:[#allocation4 + $0x148] sm:$0xff] }
 0x20c   :  { %v2867_v36 = vmax.f32 %v332_v32, 0.0  ;;  %v598_v32 = vld [vmem:[#allocation4 + $0x50] sm:$0xff] }
 0x20e   :  { %v336_v28 = vrot.slane %v2867_v36, 6 }
 0x210   :  { %v339_v20 = vsel %vm337_vm3, %v336_v28, %v335_v38  ;;  %v338_v22 = vsel %vm337_vm3, %v335_v38, %v336_v28  ;;  %v599_v38 = vld [vmem:[#allocation4 + $0x58] sm:$0xff] }
 0x211   :  { %1816 = vmatprep.mubr.msk.f32.mxu0 %vm2872_vm4, %v339_v20  ;;  %v2510_v28 = vpack.c.bf16 %v599_v38, %v598_v32  ;;  %v600_v20 = vld [vmem:[#allocation4 + $0x60] sm:$0xff]  ;;  %v806_v32 = vld [vmem:[#allocation4 + $0x150] sm:$0xff]  ;;  %v807_v38 = vld [vmem:[#allocation4 + $0x158] sm:$0xff] }
 0x212   :  { %448 = vmatmul.mubr.f32.vlgmr.msra.gmra.mrb[4].mxu0 %v2864_v35 }
 0x213   :  { %1817 = vmatprep.mubr.msk.f32.mxu0 %vm2882_vm5, %v338_v22  ;;  %2493 = vmatpush3.bf16.msra.mxu0 %v2490_v0  ;;  %v601_v22 = vld [vmem:[#allocation4 + $0x68] sm:$0xff] }
 0x214   :  { %2495 = vmatprep.subr.bf16.mxu0 %v2494_v2  ;;  %v2514_v39 = vpack.c.bf16 %v601_v22, %v600_v20  ;;  %v1823_v20 = vld [vmem:[%s3246_s3 + $0x4] ss:$0 sm:$0xff] }
 0x216   :  { %453 = vmatmul.mubr.f32.gmra.mrb[6].mxu0 %v2867_v36 }
 0x217   :  { %2497 = vmatpush3.bf16.msra.mxu0 %v2494_v2 }
 0x218   :  { %2499 = vmatprep.subr.bf16.mxu0 %v2498_v5 }
 0x21b   :  { %2501 = vmatpush3.bf16.msra.mxu0 %v2498_v5 }
 0x21c   :  { %2503 = vmatprep.subr.bf16.mxu0 %v2502_v8 }
 0x21f   :  { %2505 = vmatpush3.bf16.msra.mxu0 %v2502_v8 }
 0x220   :  { %2507 = vmatprep.subr.bf16.mxu0 %v2506_v34 }
 0x223   :  { %2509 = vmatpush3.bf16.msra.mxu0 %v2506_v34  ;;  %v2570_v34 = vpack.c.bf16 %v805_v33, %v804_v30  ;;  %v1010_v30 = vld [vmem:[#allocation4 + $0x230] sm:$0xff]  ;;  %v1011_v33 = vld [vmem:[#allocation4 + $0x238] sm:$0xff] }
 0x224   :  { %2511 = vmatprep.subr.bf16.mxu0 %v2510_v28 }
 0x227   :  { %2513 = vmatpush3.bf16.msra.mxu0 %v2510_v28  ;;  %v2574_v28 = vpack.c.bf16 %v807_v38, %v806_v32  ;;  %v1012_v32 = vld [vmem:[#allocation4 + $0x240] sm:$0xff]  ;;  %v1013_v38 = vld [vmem:[#allocation4 + $0x248] sm:$0xff] }
 0x228   :  { %2515 = vmatprep.subr.bf16.mxu0 %v2514_v39 }
 0x22b   :  { %2517 = vmatpush3.bf16.msra.mxu0 %v2514_v39 }
 0x22c   :  { %2519 = vmatprep.subr.bf16.mxu0 %v2518_v31 }
 0x22f   :  { %2521 = vmatpush3.bf16.msra.mxu0 %v2518_v31 }
 0x2e5   :  { %v2000_v9 = vpop.f32.mrb[4].mxu0 }
 0x2e6   :  { %v2001_v11 = vpop.f32.mrb[5].mxu0 }
 0x2e7   :  { %v2002_v12 = vadd.f32 %v2001_v11, %v2000_v9  ;;  %v704_v11 = vld [vmem:[#allocation4 + $0xf0] sm:$0xff] }
 0x2e9   :  { %v450_v13 = vadd.f32 %v2002_v12, %v1815_v10  ;;  %v2003_v14 = vpop.f32.mrb[6].mxu0  ;;  %v705_v12 = vld [vmem:[#allocation4 + $0xf8] sm:$0xff] }
 0x2ea   :  { %v2004_v16 = vpop.f32.mrb[7].mxu0 }
 0x2eb   :  { %v2005_v18 = vadd.f32 %v2004_v16, %v2003_v14  ;;  %v458_v21 = vmax.f32 %v450_v13, 0.0  ;;  %v2550_v13 = vpack.c.bf16 %v705_v12, %v704_v11  ;;  %v797_v14 = vld [vmem:[#allocation4 + $0x108] sm:$0xff]  ;;  %v798_v16 = vld [vmem:[#allocation4 + $0x110] sm:$0xff] }
 0x2ed   :  { %v455_v23 = vadd.f32 %v2005_v18, %v1815_v10  ;;  %v460_v25 = vrot.slane %v458_v21, 6 }
 0x2ef   :  { %v459_v24 = vmax.f32 %v455_v23, 0.0  ;;  %v800_v23 = vld [vmem:[#allocation4 + $0x120] sm:$0xff] }
 0x2f1   :  { %v461_v26 = vrot.slane %v459_v24, 6 }
 0x2f3   :  { %v463_v27 = vsel %vm337_vm3, %v461_v26, %v460_v25  ;;  %v462_v29 = vsel %vm337_vm3, %v460_v25, %v461_v26  ;;  %v802_v26 = vld [vmem:[#allocation4 + $0x130] sm:$0xff] }
 0x2f4   :  { %1820 = vmatprep.mubr.msk.f32.mxu1 %vm2872_vm4, %v463_v27  ;;  %v803_v27 = vld [vmem:[#allocation4 + $0x138] sm:$0xff] }
 0x2f5   :  { %572 = vmatmul.mubr.f32.vlgmr.msra.gmra.mrb[4].mxu1 %v458_v21  ;;  %v799_v21 = vld [vmem:[#allocation4 + $0x118] sm:$0xff] }
 0x2f6   :  { %1821 = vmatprep.mubr.msk.f32.mxu1 %vm2882_vm5, %v462_v29  ;;  %2525 = vmatpush3.bf16.msra.mxu1 %v2522_v42  ;;  %v2566_v29 = vpack.c.bf16 %v803_v27, %v802_v26  ;;  %v2578_v42 = vpack.c.bf16 %v809_v41, %v808_v19  ;;  %v1008_v26 = vld [vmem:[#allocation4 + $0x220] sm:$0xff]  ;;  %v1009_v27 = vld [vmem:[#allocation4 + $0x228] sm:$0xff] }
 0x2f7   :  { %2527 = vmatprep.subr.bf16.mxu1 %v2526_v44 }
 0x2f9   :  { %577 = vmatmul.mubr.f32.gmra.mrb[6].mxu1 %v459_v24  ;;  %v801_v24 = vld [vmem:[#allocation4 + $0x128] sm:$0xff] }
 0x2fa   :  { %2529 = vmatpush3.bf16.msra.mxu1 %v2526_v44  ;;  %v2562_v25 = vpack.c.bf16 %v801_v24, %v800_v23  ;;  %v811_v44 = vld [vmem:[#allocation4 + $0x178] sm:$0xff] }
 0x2fb   :  { %2531 = vmatprep.subr.bf16.mxu1 %v2530_v47  ;;  %v2582_v45 = vpack.c.bf16 %v811_v44, %v810_v43  ;;  %v1007_v24 = vld [vmem:[#allocation4 + $0x218] sm:$0xff]  ;;  %v1016_v43 = vld [vmem:[#allocation4 + $0x260] sm:$0xff]  ;;  %v1017_v44 = vld [vmem:[#allocation4 + $0x268] sm:$0xff] }
 0x2fe   :  { %2533 = vmatpush3.bf16.msra.mxu1 %v2530_v47  ;;  %v899_v47 = vld [vmem:[#allocation4 + $0x188] sm:$0xff] }
 0x2ff   :  { %2535 = vmatprep.subr.bf16.mxu1 %v2534_v50  ;;  %v2586_v49 = vpack.c.bf16 %v899_v47, %v898_v46  ;;  %v1018_v46 = vld [vmem:[#allocation4 + $0x270] sm:$0xff]  ;;  %v1019_v47 = vld [vmem:[#allocation4 + $0x278] sm:$0xff] }
 0x302   :  { %2537 = vmatpush3.bf16.msra.mxu1 %v2534_v50  ;;  %v901_v50 = vld [vmem:[#allocation4 + $0x198] sm:$0xff] }
 0x303   :  { %2539 = vmatprep.subr.bf16.mxu1 %v2538_v53  ;;  %v2590_v51 = vpack.c.bf16 %v901_v50, %v900_v48  ;;  %v2646_v48 = vpack.c.bf16 %v1019_v47, %v1018_v46  ;;  %v1107_v50 = vld [vmem:[#allocation4 + $0x288] sm:$0xff] }
 0x306   :  { %2541 = vmatpush3.bf16.msra.mxu1 %v2538_v53  ;;  %v903_v53 = vld [vmem:[#allocation4 + $0x1a8] sm:$0xff] }
 0x307   :  { %2543 = vmatprep.subr.bf16.mxu1 %v2542_v56  ;;  %v2594_v54 = vpack.c.bf16 %v903_v53, %v902_v52  ;;  %v1109_v53 = vld [vmem:[#allocation4 + $0x298] sm:$0xff] }
 0x30a   :  { %2545 = vmatpush3.bf16.msra.mxu1 %v2542_v56  ;;  %v905_v56 = vld [vmem:[#allocation4 + $0x1b8] sm:$0xff] }
 0x30b   :  { %2547 = vmatprep.subr.bf16.mxu1 %v2546_v59  ;;  %v2598_v57 = vpack.c.bf16 %v905_v56, %v904_v55  ;;  %v1110_v55 = vld [vmem:[#allocation4 + $0x2a0] sm:$0xff]  ;;  %v1111_v56 = vld [vmem:[#allocation4 + $0x2a8] sm:$0xff] }
 0x30e   :  { %2549 = vmatpush3.bf16.msra.mxu1 %v2546_v59  ;;  %v907_v59 = vld [vmem:[#allocation4 + $0x1c8] sm:$0xff] }
 0x30f   :  { %2551 = vmatprep.subr.bf16.mxu1 %v2550_v13 }
 0x312   :  { %2553 = vmatpush3.bf16.msra.mxu1 %v2550_v13 }
 0x313   :  { %2587 = vmatprep.subr.bf16.mxu1 %v2586_v49 }
 0x3c8   :  { %v2038_v60 = vpop.f32.mrb[4].mxu1 }
 0x3c9   :  { %v2039_v62 = vpop.f32.mrb[5].mxu1 }
 0x3ca   :  { %v2040_v63 = vadd.f32 %v2039_v62, %v2038_v60  ;;  %v2602_v60 = vpack.c.bf16 %v907_v59, %v906_v58  ;;  %v909_v62 = vld [vmem:[#allocation4 + $0x1d8] sm:$0xff]  ;;  %v1112_v58 = vld [vmem:[#allocation4 + $0x2b0] sm:$0xff] }
 0x3cb   :  { %v1113_v59 = vld [vmem:[#allocation4 + $0x2b8] sm:$0xff] }
 0x3cc   :  { %v574_v0 = vadd.f32 %v2040_v63, %v1819_v61  ;;  %v2041_v1 = vpop.f32.mrb[6].mxu1 }
 0x3cd   :  { %v2042_v2 = vpop.f32.mrb[7].mxu1 }
 0x3ce   :  { %v582_v3 = vmax.f32 %v574_v0, 0.0  ;;  %v2043_v4 = vadd.f32 %v2042_v2, %v2041_v1  ;;  %v910_v0 = vld [vmem:[#allocation4 + $0x1e0] sm:$0xff]  ;;  %v911_v1 = vld [vmem:[#allocation4 + $0x1e8] sm:$0xff] }
 0x3cf   :  { %v2610_v2 = vpack.c.bf16 %v911_v1, %v910_v0  ;;  %v1116_v0 = vld [vmem:[#allocation4 + $0x2d0] sm:$0xff]  ;;  %v1117_v1 = vld [vmem:[#allocation4 + $0x2d8] sm:$0xff] }
 0x3d0   :  { %v579_v5 = vadd.f32 %v2043_v4, %v1819_v61  ;;  %v2909_v6 = vadd.f32 %v582_v3, %v2864_v35  ;;  %v796_v35 = vld [vmem:[#allocation4 + $0x100] sm:$0xff]  ;;  %v908_v61 = vld [vmem:[#allocation4 + $0x1d0] sm:$0xff] }
 0x3d1   :  { %v2554_v18 = vpack.c.bf16 %v797_v14, %v796_v35  ;;  %v2606_v63 = vpack.c.bf16 %v909_v62, %v908_v61  ;;  %v1825_v3 = vld [vmem:[%s3246_s3 + $0x5] ss:$0 sm:$0xff]  ;;  %v1115_v62 = vld [vmem:[#allocation4 + $0x2c8] sm:$0xff] }
 0x3d2   :  { %v583_v7 = vmax.f32 %v579_v5, 0.0  ;;  %v586_v8 = vmax.f32 %v2909_v6, 0.0  ;;  %v1006_v6 = vld [vmem:[#allocation4 + $0x210] sm:$0xff]  ;;  %v1114_v61 = vld [vmem:[#allocation4 + $0x2c0] sm:$0xff] }
 0x3d3   :  { %2555 = vmatprep.subr.bf16.mxu0 %v2554_v18 }
 0x3d4   :  { %v2913_v9 = vadd.f32 %v583_v7, %v2867_v36  ;;  %2184 = vmatprep.mubr.f32.mxu0 %v586_v8  ;;  %v2558_v36 = vpack.c.bf16 %v799_v21, %v798_v16  ;;  %v912_v21 = vld [vmem:[#allocation4 + $0x1f0] sm:$0xff] }
 0x3d6   :  { %v587_v10 = vmax.f32 %v2913_v9, 0.0  ;;  %v1004_v9 = vld [vmem:[#allocation4 + $0x200] sm:$0xff] }
 0x3d8   :  { %2185 = vmatmul.mubr.f32.vlgmr.msra.gmra.mrb[8].mxu0 %v587_v10 }
 0x3d9   :  { %2557 = vmatpush3.bf16.msra.mxu0 %v2554_v18 }
 0x3da   :  { %2559 = vmatprep.subr.bf16.mxu0 %v2558_v36 }
 0x3dd   :  { %2561 = vmatpush3.bf16.msra.mxu0 %v2558_v36  ;;  %v913_v36 = vld [vmem:[#allocation4 + $0x1f8] sm:$0xff] }
 0x3de   :  { %2563 = vmatprep.subr.bf16.mxu0 %v2562_v25  ;;  %v2614_v23 = vpack.c.bf16 %v913_v36, %v912_v21 }
 0x3e1   :  { %2565 = vmatpush3.bf16.msra.mxu0 %v2562_v25  ;;  %v2622_v25 = vpack.c.bf16 %v1007_v24, %v1006_v6  ;;  %v1120_v24 = vld [vmem:[#allocation4 + $0x2f0] sm:$0xff] }
 0x3e2   :  { %2567 = vmatprep.subr.bf16.mxu0 %v2566_v29 }
 0x3e5   :  { %2569 = vmatpush3.bf16.msra.mxu0 %v2566_v29  ;;  %v2626_v29 = vpack.c.bf16 %v1009_v27, %v1008_v26  ;;  %v1831_v27 = vld [vmem:[%s3246_s3 + $0x8] ss:$0 sm:$0xff] }
 0x3e6   :  { %2571 = vmatprep.subr.bf16.mxu0 %v2570_v34 }
 0x3e9   :  { %2573 = vmatpush3.bf16.msra.mxu0 %v2570_v34  ;;  %v2630_v34 = vpack.c.bf16 %v1011_v33, %v1010_v30 }
 0x3ea   :  { %2575 = vmatprep.subr.bf16.mxu0 %v2574_v28 }
 0x3ed   :  { %2577 = vmatpush3.bf16.msra.mxu0 %v2574_v28  ;;  %v2634_v28 = vpack.c.bf16 %v1013_v38, %v1012_v32  ;;  %v2739_v32 = vmov 0.0   ;;  %v1833_v38 = vld [vmem:[%s3246_s3 + $0x9] ss:$0 sm:$0xff] }
 0x3ee   :  { %2579 = vmatprep.subr.bf16.mxu0 %v2578_v42 }
 0x3f1   :  { %2581 = vmatpush3.bf16.msra.mxu0 %v2578_v42 }
 0x3f2   :  { %2583 = vmatprep.subr.bf16.mxu0 %v2582_v45 }
 0x3f5   :  { %2585 = vmatpush3.bf16.msra.mxu0 %v2582_v45  ;;  %v2642_v45 = vpack.c.bf16 %v1017_v44, %v1016_v43 }
 0x4ab   :  { %v2186_v22 = vpop.f32.mrb[8].mxu0 }
 0x4ac   :  { %v684_v39 = vadd.f32 %v2186_v22, %v1823_v20  ;;  %v678_v37 = vpop.f32.mrb[9].mxu0  ;;  %v1015_v22 = vld [vmem:[#allocation4 + $0x258] sm:$0xff] }
 0x4ad   :  { %v679_v40 = vadd.f32 %v1823_v20, %v678_v37  ;;  %v1014_v20 = vld [vmem:[#allocation4 + $0x250] sm:$0xff]  ;;  %v1827_v37 = vld [vmem:[%s3246_s3 + $0x6] ss:$0 sm:$0xff] }
 0x4ae   :  { %v688_v17 = vmax.f32 %v684_v39, 0.0  ;;  %v2638_v39 = vpack.c.bf16 %v1015_v22, %v1014_v20 }
 0x4af   :  { %v687_v31 = vmax.f32 %v679_v40, 0.0 }
 0x4b1   :  { %2219 = vmatprep.mubr.f32.mxu1 %v687_v31 }
 0x4b2   :  { %2220 = vmatmul.mubr.f32.vlgmr.msra.gmra.mrb[8].mxu1 %v688_v17 }
 0x4b3   :  { %2589 = vmatpush3.bf16.msra.mxu1 %v2586_v49  ;;  %v1106_v49 = vld [vmem:[#allocation4 + $0x280] sm:$0xff] }
 0x4b4   :  { %2591 = vmatprep.subr.bf16.mxu1 %v2590_v51  ;;  %v2650_v52 = vpack.c.bf16 %v1107_v50, %v1106_v49 }
 0x4b7   :  { %2593 = vmatpush3.bf16.msra.mxu1 %v2590_v51  ;;  %v1108_v51 = vld [vmem:[#allocation4 + $0x290] sm:$0xff] }
 0x4b8   :  { %2595 = vmatprep.subr.bf16.mxu1 %v2594_v54 }
 0x4bb   :  { %2597 = vmatpush3.bf16.msra.mxu1 %v2594_v54  ;;  %v2654_v54 = vpack.c.bf16 %v1109_v53, %v1108_v51 }
 0x4bc   :  { %2599 = vmatprep.subr.bf16.mxu1 %v2598_v57 }
 0x4bf   :  { %2601 = vmatpush3.bf16.msra.mxu1 %v2598_v57  ;;  %v2658_v57 = vpack.c.bf16 %v1111_v56, %v1110_v55 }
 0x4c0   :  { %2603 = vmatprep.subr.bf16.mxu1 %v2602_v60 }
 0x4c3   :  { %2605 = vmatpush3.bf16.msra.mxu1 %v2602_v60  ;;  %v2662_v60 = vpack.c.bf16 %v1113_v59, %v1112_v58 }
 0x4c4   :  { %2607 = vmatprep.subr.bf16.mxu1 %v2606_v63 }
 0x4c7   :  { %2609 = vmatpush3.bf16.msra.mxu1 %v2606_v63  ;;  %v2666_v63 = vpack.c.bf16 %v1115_v62, %v1114_v61 }
 0x4c8   :  { %2611 = vmatprep.subr.bf16.mxu1 %v2610_v2 }
 0x4cb   :  { %2613 = vmatpush3.bf16.msra.mxu1 %v2610_v2  ;;  %v2670_v2 = vpack.c.bf16 %v1117_v1, %v1116_v0 }
 0x4cc   :  { %2615 = vmatprep.subr.bf16.mxu1 %v2614_v23 }
 0x4cf   :  { %2617 = vmatpush3.bf16.msra.mxu1 %v2614_v23 }
 0x4d0   :  { %2651 = vmatprep.subr.bf16.mxu1 %v2650_v52 }
 0x585   :  { %v2221_v4 = vpop.f32.mrb[8].mxu1 }
 0x586   :  { %v786_v5 = vadd.f32 %v2221_v4, %v1825_v3  ;;  %v780_v7 = vpop.f32.mrb[9].mxu1  ;;  %v1119_v4 = vld [vmem:[#allocation4 + $0x2e8] sm:$0xff] }
 0x587   :  { %v781_v11 = vadd.f32 %v1825_v3, %v780_v7  ;;  %v1118_v3 = vld [vmem:[#allocation4 + $0x2e0] sm:$0xff] }
 0x588   :  { %v790_v12 = vmax.f32 %v786_v5, 0.0  ;;  %v2674_v5 = vpack.c.bf16 %v1119_v4, %v1118_v3  ;;  %v1829_v7 = vld [vmem:[%s3246_s3 + $0x7] ss:$0 sm:$0xff] }
 0x589   :  { %v789_v13 = vmax.f32 %v781_v11, 0.0 }
 0x58a   :  { %v2928_v35 = vadd.f32 %v790_v12, %v587_v10  ;;  %v1005_v10 = vld [vmem:[#allocation4 + $0x208] sm:$0xff] }
 0x58b   :  { %v2932_v14 = vadd.f32 %v789_v13, %v586_v8  ;;  %v2618_v8 = vpack.c.bf16 %v1005_v10, %v1004_v9 }
 0x58c   :  { %v794_v18 = vmax.f32 %v2928_v35, 0.0 }
 0x58d   :  { %v793_v16 = vmax.f32 %v2932_v14, 0.0  ;;  %2619 = vmatprep.subr.bf16.mxu0 %v2618_v8 }
 0x58f   :  { %2254 = vmatprep.mubr.f32.mxu0 %v793_v16 }
 0x590   :  { %2255 = vmatmul.mubr.f32.vlgmr.msra.gmra.mrb[10].mxu0 %v794_v18 }
 0x591   :  { %2621 = vmatpush3.bf16.msra.mxu0 %v2618_v8 }
 0x592   :  { %2623 = vmatprep.subr.bf16.mxu0 %v2622_v25 }
 0x595   :  { %2625 = vmatpush3.bf16.msra.mxu0 %v2622_v25  ;;  %v1121_v25 = vld [vmem:[#allocation4 + $0x2f8] sm:$0xff] }
 0x596   :  { %2627 = vmatprep.subr.bf16.mxu0 %v2626_v29  ;;  %v2678_v26 = vpack.c.bf16 %v1121_v25, %v1120_v24 }
 0x599   :  { %2629 = vmatpush3.bf16.msra.mxu0 %v2626_v29 }
 0x59a   :  { %2631 = vmatprep.subr.bf16.mxu0 %v2630_v34 }
 0x59d   :  { %2633 = vmatpush3.bf16.msra.mxu0 %v2630_v34  ;;  %v1211_v34 = vld [vmem:[%s3247_s4] sm:$0xff] }
 0x59e   :  { %2635 = vmatprep.subr.bf16.mxu0 %v2634_v28 }
 0x5a1   :  { %2637 = vmatpush3.bf16.msra.mxu0 %v2634_v28 }
 0x5a2   :  { %2639 = vmatprep.subr.bf16.mxu0 %v2638_v39 }
 0x5a5   :  { %2641 = vmatpush3.bf16.msra.mxu0 %v2638_v39 }
 0x5a6   :  { %2643 = vmatprep.subr.bf16.mxu0 %v2642_v45 }
 0x5a9   :  { %2645 = vmatpush3.bf16.msra.mxu0 %v2642_v45 }
 0x5aa   :  { %2647 = vmatprep.subr.bf16.mxu0 %v2646_v48 }
 0x5ad   :  { %2649 = vmatpush3.bf16.msra.mxu0 %v2646_v48 }
 0x663   :  { %v2256_v40 = vpop.f32.mrb[10].mxu0 }
 0x664   :  { %v892_v31 = vadd.f32 %v2256_v40, %v1827_v37  ;;  %v886_v17 = vpop.f32.mrb[11].mxu0 }
 0x665   :  { %v887_v19 = vadd.f32 %v1827_v37, %v886_v17 }
 0x666   :  { %v896_v42 = vmax.f32 %v892_v31, 0.0 }
 0x667   :  { %v895_v41 = vmax.f32 %v887_v19, 0.0 }
 0x669   :  { %2289 = vmatprep.mubr.f32.mxu1 %v895_v41 }
 0x66a   :  { %2290 = vmatmul.mubr.f32.vlgmr.msra.gmra.mrb[10].mxu1 %v896_v42 }
 0x66b   :  { %2653 = vmatpush3.bf16.msra.mxu1 %v2650_v52 }
 0x66c   :  { %2655 = vmatprep.subr.bf16.mxu1 %v2654_v54 }
 0x66f   :  { %2657 = vmatpush3.bf16.msra.mxu1 %v2654_v54 }
 0x670   :  { %2659 = vmatprep.subr.bf16.mxu1 %v2658_v57 }
 0x673   :  { %2661 = vmatpush3.bf16.msra.mxu1 %v2658_v57 }
 0x674   :  { %2663 = vmatprep.subr.bf16.mxu1 %v2662_v60 }
 0x677   :  { %2665 = vmatpush3.bf16.msra.mxu1 %v2662_v60 }
 0x678   :  { %2667 = vmatprep.subr.bf16.mxu1 %v2666_v63 }
 0x67b   :  { %2669 = vmatpush3.bf16.msra.mxu1 %v2666_v63 }
 0x67c   :  { %2671 = vmatprep.subr.bf16.mxu1 %v2670_v2 }
 0x67f   :  { %2673 = vmatpush3.bf16.msra.mxu1 %v2670_v2 }
 0x680   :  { %2675 = vmatprep.subr.bf16.mxu1 %v2674_v5 }
 0x683   :  { %2677 = vmatpush3.bf16.msra.mxu1 %v2674_v5 }
 0x684   :  { %2679 = vmatprep.subr.bf16.mxu1 %v2678_v26 }
 0x687   :  { %2681 = vmatpush3.bf16.msra.mxu1 %v2678_v26 }
 0x73d   :  { %v2291_v11 = vpop.f32.mrb[10].mxu1 }
 0x73e   :  { %v994_v12 = vadd.f32 %v2291_v11, %v1829_v7  ;;  %v988_v13 = vpop.f32.mrb[11].mxu1 }
 0x73f   :  { %v989_v21 = vadd.f32 %v1829_v7, %v988_v13 }
 0x740   :  { %v998_v36 = vmax.f32 %v994_v12, 0.0 }
 0x741   :  { %v997_v23 = vmax.f32 %v989_v21, 0.0  ;;  %v1453_v21 = vsub.s32 0, %v2799_v15 }
 0x742   :  { %v1000_v9 = vadd.f32 %v998_v36, %v794_v18  ;;  %v1213_v36 = vld [vmem:[%s3248_s5] sm:$0x3] }
 0x743   :  { %v999_v10 = vadd.f32 %v997_v23, %v793_v16  ;;  %v1212_v16 = vld [vmem:[%s3247_s4 + $0x8] sm:$0xff]  ;;  %v1457_v23 = vsub.s32 1, %v2799_v15 }
 0x744   :  { %v1002_v8 = vmax.f32 %v1000_v9, 0.0  ;;  %1295 = vmatprep.subr.mxu0 %v1212_v16  ;;  %1593 = vmatprep.subr.mxu1 %v1212_v16  ;;  %v3031_v9 = vrot.slane %v1213_v36, %v1453_v21 }
 0x745   :  { %v1001_v6 = vmax.f32 %v999_v10, 0.0  ;;  %v3033_v10 = vrot.slane %v1213_v36, %v1457_v23 }
 0x747   :  { %2324 = vmatprep.mubr.f32.mxu0 %v1001_v6 }
 0x748   :  { %2325 = vmatmul.mubr.f32.vlgmr.msra.gmra.mrb[12].mxu0 %v1002_v8 }
 0x749   :  { %1359 = vmatprep.mubr.f32.mxu0 %v2739_v32  ;;  %1296 = vmatpush1.msra.mxu0 %v1211_v34 }
 0x81b   :  { %v2326_v29 = vpop.f32.mrb[12].mxu0 }
 0x81c   :  { %v1100_v30 = vadd.f32 %v2326_v29, %v1831_v27  ;;  %v1094_v35 = vpop.f32.mrb[13].mxu0 }
 0x81d   :  { %v1095_v18 = vadd.f32 %v1831_v27, %v1094_v35 }
 0x81e   :  { %v1104_v14 = vmax.f32 %v1100_v30, 0.0 }
 0x81f   :  { %v1103_v33 = vmax.f32 %v1095_v18, 0.0 }
 0x821   :  { %2359 = vmatprep.mubr.f32.mxu1 %v1103_v33 }
 0x822   :  { %2360 = vmatmul.mubr.f32.vlgmr.msra.gmra.mrb[12].mxu1 %v1104_v14 }
 0x823   :  { %1594 = vmatpush1.msra.mxu1 %v1211_v34  ;;  %1657 = vmatprep.mubr.f32.mxu1 %v2739_v32 }
 0x8f5   :  { %v2361_v28 = vpop.f32.mrb[12].mxu1 }
 0x8f6   :  { %v1196_v20 = vpop.f32.mrb[13].mxu1  ;;  %v1202_v31 = vadd.f32 %v2361_v28, %v1833_v38 }
 0x8f7   :  { %v1197_v22 = vadd.f32 %v1833_v38, %v1196_v20 }
 0x8f8   :  { %v1206_v17 = vmax.f32 %v1202_v31, 0.0 }
 0x8f9   :  { %v1205_v39 = vmax.f32 %v1197_v22, 0.0 }
 0x8fa   :  { %v1208_v19 = vadd.f32 %v1206_v17, %v1002_v8 }
 0x8fb   :  { %v1207_v37 = vadd.f32 %v1205_v39, %v1001_v6 }
 0x8fc   :  { %v1210_v41 = vmax.f32 %v1208_v19, 0.0 }
 0x8fd   :  { %v1209_v40 = vmax.f32 %v1207_v37, 0.0 }
 0x8ff   :  { %1214 = vxpose.xlu0.b32.start.end [1/1] (short) %v1209_v40, 128 }
 0x93c   :  { %1513 = vxpose.xlu0.b32.start.end [1/1] (short) %v1210_v41, 128 }
 0x97f   :  { %v1230_v42 = vpop.trf.xlu0 }
 0x980   :  { %1834 = vmatmul.mubr.msk.f32.vlgmr.msra.gmra.mrb[14].mxu0 %vm1246_vm6, %v1230_v42 }
 0x981   :  { %1365 = vmatprep.mubr.f32.mxu0 %v2739_v32 }
 0x983   :  { %v1231_v43 = vpop.trf.xlu0 }
 0x984   :  { %1835 = vmatmul.mubr.msk.f32.gmra.mrb[16].mxu0 %vm1246_vm6, %v1231_v43 }
 0x985   :  { %1371 = vmatprep.mubr.f32.mxu0 %v2739_v32 }
 0x987   :  { %v1232_v44 = vpop.trf.xlu0 }
 0x988   :  { %1836 = vmatmul.mubr.msk.f32.gmra.mrb[18].mxu0 %vm1246_vm6, %v1232_v44 }
 0x989   :  { %1377 = vmatprep.mubr.f32.mxu0 %v2739_v32 }
 0x98b   :  { %v1233_v45 = vpop.trf.xlu0 }
 0x98c   :  { %1837 = vmatmul.mubr.msk.f32.gmra.mrb[20].mxu0 %vm1246_vm6, %v1233_v45 }
 0x98d   :  { %1383 = vmatprep.mubr.f32.mxu0 %v2739_v32 }
 0x98f   :  { %v1234_v46 = vpop.trf.xlu0 }
 0x990   :  { %1838 = vmatmul.mubr.msk.f32.gmra.mrb[22].mxu0 %vm1246_vm6, %v1234_v46 }
 0x991   :  { %1389 = vmatprep.mubr.f32.mxu0 %v2739_v32 }
 0x993   :  { %v1235_v47 = vpop.trf.xlu0 }
 0x994   :  { %1839 = vmatmul.mubr.msk.f32.gmra.mrb[24].mxu0 %vm1246_vm6, %v1235_v47 }
 0x995   :  { %1395 = vmatprep.mubr.f32.mxu0 %v2739_v32 }
 0x997   :  { %v1236_v48 = vpop.trf.xlu0 }
 0x998   :  { %1840 = vmatmul.mubr.msk.f32.gmra.mrb[26].mxu0 %vm1246_vm6, %v1236_v48 }
 0x999   :  { %1401 = vmatprep.mubr.f32.mxu0 %v2739_v32 }
 0x99b   :  { %v1237_v49 = vpop.trf.xlu0 }
 0x99c   :  { %1841 = vmatmul.mubr.msk.f32.gmra.mrb[28].mxu0 %vm1246_vm6, %v1237_v49 }
 0x99d   :  { %1407 = vmatprep.mubr.f32.mxu0 %v2739_v32 }
 0x99f   :  { %v1238_v50 = vpop.trf.xlu0 }
 0x9a0   :  { %1842 = vmatmul.mubr.msk.f32.gmra.mrb[30].mxu0 %vm1246_vm6, %v1238_v50 }
 0x9a1   :  { %1413 = vmatprep.mubr.f32.mxu0 %v2739_v32 }
 0x9a3   :  { %v1239_v51 = vpop.trf.xlu0 }
 0x9a4   :  { %1843 = vmatmul.mubr.msk.f32.gmra.mrb[32].mxu0 %vm1246_vm6, %v1239_v51 }
 0x9a5   :  { %1419 = vmatprep.mubr.f32.mxu0 %v2739_v32 }
 0x9a7   :  { %v1240_v52 = vpop.trf.xlu0 }
 0x9a8   :  { %1844 = vmatmul.mubr.msk.f32.gmra.mrb[34].mxu0 %vm1246_vm6, %v1240_v52 }
 0x9a9   :  { %1425 = vmatprep.mubr.f32.mxu0 %v2739_v32 }
 0x9ab   :  { %v1241_v53 = vpop.trf.xlu0 }
 0x9ac   :  { %1845 = vmatmul.mubr.msk.f32.gmra.mrb[36].mxu0 %vm1246_vm6, %v1241_v53 }
 0x9ad   :  { %1431 = vmatprep.mubr.f32.mxu0 %v2739_v32 }
 0x9af   :  { %v1242_v54 = vpop.trf.xlu0 }
 0x9b0   :  { %1846 = vmatmul.mubr.msk.f32.gmra.mrb[38].mxu0 %vm1246_vm6, %v1242_v54 }
 0x9b1   :  { %1437 = vmatprep.mubr.f32.mxu0 %v2739_v32 }
 0x9b3   :  { %v1243_v55 = vpop.trf.xlu0 }
 0x9b4   :  { %1847 = vmatmul.mubr.msk.f32.gmra.mrb[40].mxu0 %vm1246_vm6, %v1243_v55 }
 0x9b5   :  { %1441 = vmatprep.mubr.f32.mxu0 %v2739_v32 }
 0x9b7   :  { %v1244_v56 = vpop.trf.xlu0 }
 0x9b8   :  { %1848 = vmatmul.mubr.msk.f32.gmra.mrb[42].mxu0 %vm1246_vm6, %v1244_v56 }
 0x9b9   :  { %1445 = vmatprep.mubr.f32.mxu0 %v2739_v32 }
 0x9bb   :  { %v1245_v57 = vpop.trf.xlu0 }
 0x9bc   :  { %1849 = vmatmul.mubr.msk.f32.gmra.mrb[44].mxu0 %vm1246_vm6, %v1245_v57 }
 0x9bf   :  { %v1529_v58 = vpop.trf.xlu0 }
 0x9c0   :  { %1850 = vmatmul.mubr.msk.f32.vlgmr.msra.gmra.mrb[14].mxu1 %vm1246_vm6, %v1529_v58 }
 0x9c1   :  { %1663 = vmatprep.mubr.f32.mxu1 %v2739_v32 }
 0x9c3   :  { %v1530_v59 = vpop.trf.xlu0 }
 0x9c4   :  { %1851 = vmatmul.mubr.msk.f32.gmra.mrb[16].mxu1 %vm1246_vm6, %v1530_v59 }
 0x9c5   :  { %1669 = vmatprep.mubr.f32.mxu1 %v2739_v32 }
 0x9c7   :  { %v1531_v60 = vpop.trf.xlu0 }
 0x9c8   :  { %1852 = vmatmul.mubr.msk.f32.gmra.mrb[18].mxu1 %vm1246_vm6, %v1531_v60 }
 0x9c9   :  { %1675 = vmatprep.mubr.f32.mxu1 %v2739_v32 }
 0x9cb   :  { %v1532_v61 = vpop.trf.xlu0 }
 0x9cc   :  { %1853 = vmatmul.mubr.msk.f32.gmra.mrb[20].mxu1 %vm1246_vm6, %v1532_v61 }
 0x9cd   :  { %1681 = vmatprep.mubr.f32.mxu1 %v2739_v32 }
 0x9cf   :  { %v1533_v62 = vpop.trf.xlu0 }
 0x9d0   :  { %1854 = vmatmul.mubr.msk.f32.gmra.mrb[22].mxu1 %vm1246_vm6, %v1533_v62 }
 0x9d1   :  { %1687 = vmatprep.mubr.f32.mxu1 %v2739_v32 }
 0x9d3   :  { %v1534_v63 = vpop.trf.xlu0 }
 0x9d4   :  { %1855 = vmatmul.mubr.msk.f32.gmra.mrb[24].mxu1 %vm1246_vm6, %v1534_v63 }
 0x9d5   :  { %1693 = vmatprep.mubr.f32.mxu1 %v2739_v32 }
 0x9d7   :  { %v1535_v0 = vpop.trf.xlu0 }
 0x9d8   :  { %1856 = vmatmul.mubr.msk.f32.gmra.mrb[26].mxu1 %vm1246_vm6, %v1535_v0 }
 0x9d9   :  { %1699 = vmatprep.mubr.f32.mxu1 %v2739_v32 }
 0x9db   :  { %v1536_v1 = vpop.trf.xlu0 }
 0x9dc   :  { %1857 = vmatmul.mubr.msk.f32.gmra.mrb[28].mxu1 %vm1246_vm6, %v1536_v1 }
 0x9dd   :  { %1705 = vmatprep.mubr.f32.mxu1 %v2739_v32 }
 0x9df   :  { %v1537_v2 = vpop.trf.xlu0 }
 0x9e0   :  { %1858 = vmatmul.mubr.msk.f32.gmra.mrb[30].mxu1 %vm1246_vm6, %v1537_v2 }
 0x9e1   :  { %1711 = vmatprep.mubr.f32.mxu1 %v2739_v32 }
 0x9e3   :  { %v1538_v3 = vpop.trf.xlu0 }
 0x9e4   :  { %1859 = vmatmul.mubr.msk.f32.gmra.mrb[32].mxu1 %vm1246_vm6, %v1538_v3 }
 0x9e5   :  { %1717 = vmatprep.mubr.f32.mxu1 %v2739_v32 }
 0x9e7   :  { %v1539_v4 = vpop.trf.xlu0 }
 0x9e8   :  { %1860 = vmatmul.mubr.msk.f32.gmra.mrb[34].mxu1 %vm1246_vm6, %v1539_v4 }
 0x9e9   :  { %1723 = vmatprep.mubr.f32.mxu1 %v2739_v32 }
 0x9eb   :  { %v1540_v5 = vpop.trf.xlu0 }
 0x9ec   :  { %1861 = vmatmul.mubr.msk.f32.gmra.mrb[36].mxu1 %vm1246_vm6, %v1540_v5 }
 0x9ed   :  { %1729 = vmatprep.mubr.f32.mxu1 %v2739_v32 }
 0x9ef   :  { %v1541_v7 = vpop.trf.xlu0 }
 0x9f0   :  { %1862 = vmatmul.mubr.msk.f32.gmra.mrb[38].mxu1 %vm1246_vm6, %v1541_v7 }
 0x9f1   :  { %1735 = vmatprep.mubr.f32.mxu1 %v2739_v32 }
 0x9f3   :  { %v1542_v11 = vpop.trf.xlu0 }
 0x9f4   :  { %1863 = vmatmul.mubr.msk.f32.gmra.mrb[40].mxu1 %vm1246_vm6, %v1542_v11 }
 0x9f5   :  { %1739 = vmatprep.mubr.f32.mxu1 %v2739_v32 }
 0x9f7   :  { %v1543_v12 = vpop.trf.xlu0 }
 0x9f8   :  { %1864 = vmatmul.mubr.msk.f32.gmra.mrb[42].mxu1 %vm1246_vm6, %v1543_v12 }
 0x9f9   :  { %1743 = vmatprep.mubr.f32.mxu1 %v2739_v32 }
 0x9fb   :  { %v1544_v13 = vpop.trf.xlu0 }
 0x9fc   :  { %1865 = vmatmul.mubr.msk.f32.gmra.mrb[44].mxu1 %vm1246_vm6, %v1544_v13 }
 0xa53   :  { %v1361_v6 = vpop.f32.mrb[14].mxu0 }
 0xa54   :  { %v1461_v8 = vadd.f32 %v3031_v9, %v1361_v6  ;;  %v1363_v24 = vpop.f32.mrb[15].mxu0 }
 0xa55   :  { %v1462_v25 = vadd.f32 %v3033_v10, %v1363_v24 }
 0xa56   :  { %1487 = vst [vmem:[%s3249_s6] sm:$0xff] %v1461_v8 }
 0xa57   :  { %1488 = vst [vmem:[%s3249_s6 + $0x8] sm:$0xff] %v1462_v25  ;;  %v1367_v26 = vpop.f32.mrb[16].mxu0 }
 0xa58   :  { %v1463_v15 = vadd.f32 %v3031_v9, %v1367_v26  ;;  %v1369_v27 = vpop.f32.mrb[17].mxu0 }
 0xa59   :  { %v1464_v29 = vadd.f32 %v3033_v10, %v1369_v27 }
 0xa5a   :  { %1489 = vst [vmem:[%s3249_s6 + $0x10] sm:$0xff] %v1463_v15 }
 0xa5b   :  { %1490 = vst [vmem:[%s3249_s6 + $0x18] sm:$0xff] %v1464_v29  ;;  %v1373_v30 = vpop.f32.mrb[18].mxu0 }
 0xa5c   :  { %v1465_v35 = vadd.f32 %v3031_v9, %v1373_v30  ;;  %v1375_v18 = vpop.f32.mrb[19].mxu0 }
 0xa5d   :  { %v1466_v33 = vadd.f32 %v3033_v10, %v1375_v18 }
 0xa5e   :  { %1491 = vst [vmem:[%s3249_s6 + $0x20] sm:$0xff] %v1465_v35 }
 0xa5f   :  { %1492 = vst [vmem:[%s3249_s6 + $0x28] sm:$0xff] %v1466_v33  ;;  %v1379_v14 = vpop.f32.mrb[20].mxu0 }
 0xa60   :  { %v1467_v16 = vadd.f32 %v3031_v9, %v1379_v14  ;;  %v1381_v34 = vpop.f32.mrb[21].mxu0 }
 0xa61   :  { %v1468_v32 = vadd.f32 %v3033_v10, %v1381_v34 }
 0xa62   :  { %1493 = vst [vmem:[%s3249_s6 + $0x30] sm:$0xff] %v1467_v16 }
 0xa63   :  { %1494 = vst [vmem:[%s3249_s6 + $0x38] sm:$0xff] %v1468_v32  ;;  %v1385_v38 = vpop.f32.mrb[22].mxu0 }
 0xa64   :  { %v1469_v28 = vadd.f32 %v3031_v9, %v1385_v38  ;;  %v1387_v20 = vpop.f32.mrb[23].mxu0 }
 0xa65   :  { %v1470_v22 = vadd.f32 %v3033_v10, %v1387_v20 }
 0xa66   :  { %1495 = vst [vmem:[%s3249_s6 + $0x40] sm:$0xff] %v1469_v28 }
 0xa67   :  { %1496 = vst [vmem:[%s3249_s6 + $0x48] sm:$0xff] %v1470_v22  ;;  %v1391_v39 = vpop.f32.mrb[24].mxu0 }
 0xa68   :  { %v1471_v37 = vadd.f32 %v3031_v9, %v1391_v39  ;;  %v1393_v40 = vpop.f32.mrb[25].mxu0 }
 0xa69   :  { %v1472_v31 = vadd.f32 %v3033_v10, %v1393_v40 }
 0xa6a   :  { %1497 = vst [vmem:[%s3249_s6 + $0x50] sm:$0xff] %v1471_v37 }
 0xa6b   :  { %1498 = vst [vmem:[%s3249_s6 + $0x58] sm:$0xff] %v1472_v31  ;;  %v1397_v17 = vpop.f32.mrb[26].mxu0 }
 0xa6c   :  { %v1473_v19 = vadd.f32 %v3031_v9, %v1397_v17  ;;  %v1399_v41 = vpop.f32.mrb[27].mxu0 }
 0xa6d   :  { %v1474_v42 = vadd.f32 %v3033_v10, %v1399_v41 }
 0xa6e   :  { %1499 = vst [vmem:[%s3249_s6 + $0x60] sm:$0xff] %v1473_v19 }
 0xa6f   :  { %1500 = vst [vmem:[%s3249_s6 + $0x68] sm:$0xff] %v1474_v42  ;;  %v1403_v43 = vpop.f32.mrb[28].mxu0 }
 0xa70   :  { %v1475_v44 = vadd.f32 %v3031_v9, %v1403_v43  ;;  %v1405_v45 = vpop.f32.mrb[29].mxu0 }
 0xa71   :  { %v1476_v46 = vadd.f32 %v3033_v10, %v1405_v45 }
 0xa72   :  { %1501 = vst [vmem:[%s3249_s6 + $0x70] sm:$0xff] %v1475_v44 }
 0xa73   :  { %1502 = vst [vmem:[%s3249_s6 + $0x78] sm:$0xff] %v1476_v46  ;;  %v1409_v47 = vpop.f32.mrb[30].mxu0 }
 0xa74   :  { %v1477_v48 = vadd.f32 %v3031_v9, %v1409_v47  ;;  %v1411_v49 = vpop.f32.mrb[31].mxu0 }
 0xa75   :  { %v1478_v50 = vadd.f32 %v3033_v10, %v1411_v49 }
 0xa76   :  { %1503 = vst [vmem:[%s3249_s6 + $0x80] sm:$0xff] %v1477_v48 }
 0xa77   :  { %1504 = vst [vmem:[%s3249_s6 + $0x88] sm:$0xff] %v1478_v50  ;;  %v1415_v51 = vpop.f32.mrb[32].mxu0 }
 0xa78   :  { %v1479_v52 = vadd.f32 %v3031_v9, %v1415_v51  ;;  %v1417_v53 = vpop.f32.mrb[33].mxu0 }
 0xa79   :  { %v1480_v54 = vadd.f32 %v3033_v10, %v1417_v53 }
 0xa7a   :  { %1505 = vst [vmem:[%s3249_s6 + $0x90] sm:$0xff] %v1479_v52 }
 0xa7b   :  { %1506 = vst [vmem:[%s3249_s6 + $0x98] sm:$0xff] %v1480_v54  ;;  %v1421_v55 = vpop.f32.mrb[34].mxu0 }
 0xa7c   :  { %v1481_v56 = vadd.f32 %v3031_v9, %v1421_v55  ;;  %v1423_v57 = vpop.f32.mrb[35].mxu0 }
 0xa7d   :  { %v1482_v58 = vadd.f32 %v3033_v10, %v1423_v57 }
 0xa7e   :  { %1507 = vst [vmem:[%s3249_s6 + $0xa0] sm:$0xff] %v1481_v56 }
 0xa7f   :  { %1508 = vst [vmem:[%s3249_s6 + $0xa8] sm:$0xff] %v1482_v58  ;;  %v1427_v59 = vpop.f32.mrb[36].mxu0 }
 0xa80   :  { %v1483_v60 = vadd.f32 %v3031_v9, %v1427_v59  ;;  %v1429_v61 = vpop.f32.mrb[37].mxu0 }
 0xa81   :  { %v1484_v62 = vadd.f32 %v3033_v10, %v1429_v61 }
 0xa82   :  { %1509 = vst [vmem:[%s3249_s6 + $0xb0] sm:$0xff] %v1483_v60 }
 0xa83   :  { %1510 = vst [vmem:[%s3249_s6 + $0xb8] sm:$0xff] %v1484_v62  ;;  %v1433_v63 = vpop.f32.mrb[38].mxu0 }
 0xa84   :  { %v1485_v0 = vadd.f32 %v3031_v9, %v1433_v63  ;;  %v1435_v1 = vpop.f32.mrb[39].mxu0 }
 0xa85   :  { %v1486_v2 = vadd.f32 %v3033_v10, %v1435_v1 }
 0xa86   :  { %1511 = vst [vmem:[%s3249_s6 + $0xc0] sm:$0xf] %v1485_v0 }
 0xa87   :  { %1512 = vst [vmem:[%s3249_s6 + $0xc8] sm:$0xf] %v1486_v2  ;;  %v1439_v3 = vpop.f32.mrb[40].mxu0 }
 0xa88   :  { %v1440_v4 = vpop.f32.mrb[41].mxu0 }
 0xa8b   :  { %v1443_v5 = vpop.f32.mrb[42].mxu0 }
 0xa8c   :  { %v1444_v7 = vpop.f32.mrb[43].mxu0 }
 0xa8f   :  { %v1447_v11 = vpop.f32.mrb[44].mxu0 }
 0xa90   :  { %v1448_v12 = vpop.f32.mrb[45].mxu0 }
 0xa93   :  { %v1659_v13 = vpop.f32.mrb[14].mxu1 }
 0xa94   :  { %v1748_v21 = vadd.f32 %v1659_v13, %v3031_v9  ;;  %v1661_v36 = vpop.f32.mrb[15].mxu1 }
 0xa95   :  { %v1749_v23 = vadd.f32 %v1661_v36, %v3033_v10 }
 0xa96   :  { %1866 = vst [vmem:[%s3249_s6 + $0xd0] sm:$0xff] %v1748_v21 }
 0xa97   :  { %1867 = vst [vmem:[%s3249_s6 + $0xd8] sm:$0xff] %v1749_v23  ;;  %v1665_v6 = vpop.f32.mrb[16].mxu1 }
 0xa98   :  { %v1750_v8 = vadd.f32 %v1665_v6, %v3031_v9  ;;  %v1667_v24 = vpop.f32.mrb[17].mxu1 }
 0xa99   :  { %v1751_v25 = vadd.f32 %v1667_v24, %v3033_v10 }
 0xa9a   :  { %1868 = vst [vmem:[%s3249_s6 + $0xe0] sm:$0xff] %v1750_v8 }
 0xa9b   :  { %1869 = vst [vmem:[%s3249_s6 + $0xe8] sm:$0xff] %v1751_v25  ;;  %v1671_v26 = vpop.f32.mrb[18].mxu1 }
 0xa9c   :  { %v1752_v15 = vadd.f32 %v1671_v26, %v3031_v9  ;;  %v1673_v27 = vpop.f32.mrb[19].mxu1 }
 0xa9d   :  { %v1753_v29 = vadd.f32 %v1673_v27, %v3033_v10 }
 0xa9e   :  { %1870 = vst [vmem:[%s3249_s6 + $0xf0] sm:$0xff] %v1752_v15 }
 0xa9f   :  { %1871 = vst [vmem:[%s3249_s6 + $0xf8] sm:$0xff] %v1753_v29  ;;  %v1677_v30 = vpop.f32.mrb[20].mxu1 }
 0xaa0   :  { %v1754_v35 = vadd.f32 %v1677_v30, %v3031_v9  ;;  %v1679_v18 = vpop.f32.mrb[21].mxu1 }
 0xaa1   :  { %v1755_v33 = vadd.f32 %v1679_v18, %v3033_v10 }
 0xaa2   :  { %1872 = vst [vmem:[%s3249_s6 + $0x100] sm:$0xff] %v1754_v35 }
 0xaa3   :  { %1873 = vst [vmem:[%s3249_s6 + $0x108] sm:$0xff] %v1755_v33  ;;  %v1683_v14 = vpop.f32.mrb[22].mxu1 }
 0xaa4   :  { %v1756_v16 = vadd.f32 %v1683_v14, %v3031_v9  ;;  %v1685_v34 = vpop.f32.mrb[23].mxu1 }
 0xaa5   :  { %v1757_v32 = vadd.f32 %v1685_v34, %v3033_v10 }
 0xaa6   :  { %1874 = vst [vmem:[%s3249_s6 + $0x110] sm:$0xff] %v1756_v16 }
 0xaa7   :  { %1875 = vst [vmem:[%s3249_s6 + $0x118] sm:$0xff] %v1757_v32  ;;  %v1689_v38 = vpop.f32.mrb[24].mxu1 }
 0xaa8   :  { %v1758_v28 = vadd.f32 %v1689_v38, %v3031_v9  ;;  %v1691_v20 = vpop.f32.mrb[25].mxu1 }
 0xaa9   :  { %v1759_v22 = vadd.f32 %v1691_v20, %v3033_v10 }
 0xaaa   :  { %1876 = vst [vmem:[%s3249_s6 + $0x120] sm:$0xff] %v1758_v28 }
 0xaab   :  { %1877 = vst [vmem:[%s3249_s6 + $0x128] sm:$0xff] %v1759_v22  ;;  %v1695_v39 = vpop.f32.mrb[26].mxu1 }
 0xaac   :  { %v1760_v37 = vadd.f32 %v1695_v39, %v3031_v9  ;;  %v1697_v40 = vpop.f32.mrb[27].mxu1 }
 0xaad   :  { %v1761_v31 = vadd.f32 %v1697_v40, %v3033_v10 }
 0xaae   :  { %1878 = vst [vmem:[%s3249_s6 + $0x130] sm:$0xff] %v1760_v37 }
 0xaaf   :  { %1879 = vst [vmem:[%s3249_s6 + $0x138] sm:$0xff] %v1761_v31  ;;  %v1701_v17 = vpop.f32.mrb[28].mxu1 }
 0xab0   :  { %v1762_v19 = vadd.f32 %v1701_v17, %v3031_v9  ;;  %v1703_v41 = vpop.f32.mrb[29].mxu1 }
 0xab1   :  { %v1763_v42 = vadd.f32 %v1703_v41, %v3033_v10 }
 0xab2   :  { %1880 = vst [vmem:[%s3249_s6 + $0x140] sm:$0xff] %v1762_v19 }
 0xab3   :  { %1881 = vst [vmem:[%s3249_s6 + $0x148] sm:$0xff] %v1763_v42  ;;  %v1707_v43 = vpop.f32.mrb[30].mxu1 }
 0xab4   :  { %v1764_v44 = vadd.f32 %v1707_v43, %v3031_v9  ;;  %v1709_v45 = vpop.f32.mrb[31].mxu1 }
 0xab5   :  { %v1765_v46 = vadd.f32 %v1709_v45, %v3033_v10 }
 0xab6   :  { %1882 = vst [vmem:[%s3249_s6 + $0x150] sm:$0xff] %v1764_v44 }
 0xab7   :  { %1883 = vst [vmem:[%s3249_s6 + $0x158] sm:$0xff] %v1765_v46  ;;  %v1713_v47 = vpop.f32.mrb[32].mxu1 }
 0xab8   :  { %v1766_v48 = vadd.f32 %v1713_v47, %v3031_v9  ;;  %v1715_v49 = vpop.f32.mrb[33].mxu1 }
 0xab9   :  { %v1767_v50 = vadd.f32 %v1715_v49, %v3033_v10 }
 0xaba   :  { %1884 = vst [vmem:[%s3249_s6 + $0x160] sm:$0xff] %v1766_v48 }
 0xabb   :  { %1885 = vst [vmem:[%s3249_s6 + $0x168] sm:$0xff] %v1767_v50  ;;  %v1719_v51 = vpop.f32.mrb[34].mxu1 }
 0xabc   :  { %v1768_v52 = vadd.f32 %v1719_v51, %v3031_v9  ;;  %v1721_v53 = vpop.f32.mrb[35].mxu1 }
 0xabd   :  { %v1769_v54 = vadd.f32 %v1721_v53, %v3033_v10 }
 0xabe   :  { %1886 = vst [vmem:[%s3249_s6 + $0x170] sm:$0xff] %v1768_v52 }
 0xabf   :  { %1887 = vst [vmem:[%s3249_s6 + $0x178] sm:$0xff] %v1769_v54  ;;  %v1725_v55 = vpop.f32.mrb[36].mxu1 }
 0xac0   :  { %v1770_v56 = vadd.f32 %v1725_v55, %v3031_v9  ;;  %v1727_v57 = vpop.f32.mrb[37].mxu1 }
 0xac1   :  { %v1771_v58 = vadd.f32 %v1727_v57, %v3033_v10 }
 0xac2   :  { %1888 = vst [vmem:[%s3249_s6 + $0x180] sm:$0xff] %v1770_v56 }
 0xac3   :  { %1889 = vst [vmem:[%s3249_s6 + $0x188] sm:$0xff] %v1771_v58  ;;  %v1731_v59 = vpop.f32.mrb[38].mxu1 }
 0xac4   :  { %v1772_v60 = vadd.f32 %v1731_v59, %v3031_v9  ;;  %v1733_v61 = vpop.f32.mrb[39].mxu1 }
 0xac5   :  { %v1773_v62 = vadd.f32 %v1733_v61, %v3033_v10 }
 0xac6   :  { %1890 = vst [vmem:[%s3249_s6 + $0x190] sm:$0xf] %v1772_v60 }
 0xac7   :  { %1891 = vst [vmem:[%s3249_s6 + $0x198] sm:$0xf] %v1773_v62  ;;  %v1737_v63 = vpop.f32.mrb[40].mxu1 }
 0xac8   :  { %v1738_v0 = vpop.f32.mrb[41].mxu1 }
 0xacb   :  { %v1741_v1 = vpop.f32.mrb[42].mxu1 }
 0xacc   :  { %v1742_v2 = vpop.f32.mrb[43].mxu1 }
 0xacf   :  { %v1745_v3 = vpop.f32.mrb[44].mxu1 }
 0xad0   :  { %v1746_v4 = vpop.f32.mrb[45].mxu1 }
 0xad1   :  { %1805 = vsyncpa [#allocation3], 1 }
 0xad2   :  { %1806 = vsyncpa [#allocation5], 1 }

</bundles_post_ra>
